<compile_context>
chip_gen: v7x
topology: tpu7x:2x2x1
jax: 0.10.0
libtpu: 0.0.40
codegen_flags: <defaults>
</compile_context>

<pallas_src>
import functools

import numpy as np
import jax
import jax.numpy as jnp
from jax.experimental import pallas as pl
from jax.experimental.pallas import tpu as pltpu

_MASK_VALUE = -1e30   # finite stand-in for masked_fill(-inf); exp() underflows to 0 in f32
# TODO(synk): rows that are fully masked return a uniform 1/Lk attention row instead of the
# NaNs PyTorch's masked_fill(-inf) + softmax would produce (intentional, documented divergence).
# TODO(synk): a flash-style k-reduction axis is not added because the module must return the
# full (Lq, Lk) attention matrix, which pins per-step VMEM at O(tq*Lk) regardless.


# --------------------------------- kernels ---------------------------------- #
def _scores(q_ref, k_ref, inv_temperature):
    # batched contraction over d_k; never materializes k^T in VMEM
    return jnp.einsum("bqd,bkd->bqk", q_ref[...], k_ref[...],
                      preferred_element_type=jnp.float32) * inv_temperature


def _finish(s, v, out_ref, attn_ref, approx):
    """Shared numerically-stable softmax + PV tail. s: (Bt, Tq, Lk) float32."""
    m = jnp.max(s, axis=-1, keepdims=True)
    e = jnp.exp(s - m)
    denom = jnp.sum(e, axis=-1, keepdims=True)
    p = e * pl.reciprocal(denom, approx=approx)
    attn_ref[...] = p.astype(attn_ref.dtype)            # eval-mode dropout == identity
    out = jnp.einsum("bqk,bkd->bqd", p.astype(v.dtype), v,
                     preferred_element_type=jnp.float32)
    out_ref[...] = out.astype(out_ref.dtype)


def _kernel_nomask(inv_t, approx, q_ref, k_ref, v_ref, out_ref, attn_ref):
    _finish(_scores(q_ref, k_ref, inv_t), v_ref[...], out_ref, attn_ref, approx)


def _kernel_keymask(inv_t, approx, q_ref, k_ref, v_ref, km_ref, out_ref, attn_ref):
    # km_ref: (Bt, 1, Lk) int32, nonzero == masked out; broadcast over Lq in-kernel
    s = _scores(q_ref, k_ref, inv_t)
    s = jnp.where(km_ref[...] != 0, _MASK_VALUE, s)
    _finish(s, v_ref[...], out_ref, attn_ref, approx)


def _kernel_fullmask(inv_t, approx, q_ref, k_ref, v_ref, m_ref, out_ref, attn_ref):
    # m_ref: (Bt, Tq, Lk) int8 general mask (fallback path)
    s = _scores(q_ref, k_ref, inv_t)
    s = jnp.where(m_ref[...] != 0, _MASK_VALUE, s)
    _finish(s, v_ref[...], out_ref, attn_ref, approx)


def _kernel_numvalid(inv_t, approx, block_b, nv_ref,
                     q_ref, k_ref, v_ref, out_ref, attn_ref):
    # nv_ref: (bsz,) int32 in SMEM (scalar prefetch). Padding mask rebuilt in-kernel:
    # zero mask bytes move through HBM.
    s = _scores(q_ref, k_ref, inv_t)                     # (Bt, Tq, Lk) f32
    bt, tq, lk = s.shape
    b0 = pl.program_id(0) * block_b
    key_idx = jax.lax.broadcasted_iota(jnp.int32, (tq, lk), 1)
    rows = [jnp.where(key_idx >= nv_ref[b0 + i], _MASK_VALUE, s[i])
            for i in range(block_b)]                     # static unroll over the batch block
    s = jnp.stack(rows, axis=0)
    _finish(s, v_ref[...], out_ref, attn_ref, approx)


# ------------------------------ block selection ------------------------------ #
def _divisors_desc(n):
    return [d for d in range(n, 0, -1) if n % d == 0]


def _pick_blocks(bsz, len_q, len_k, d_k, d_v, io_bytes, mask_bytes_per_batch,
                 block_b, block_q, vmem_budget):
    if block_q is None:
        cands = [d for d in _divisors_desc(len_q) if d <= 512 and d % 8 == 0]
        block_q = cands[0] if cands else len_q
    q_steps = len_q // block_q

    def footprint(bb):
        per_step = bb * ((block_q * d_k + len_k * d_k + len_k * d_v
                          + block_q * d_v + block_q * len_k) * io_bytes
                         + mask_bytes_per_batch)
        return 2 * per_step                              # double-buffered tiles

    if block_b is None:
        block_b = 1                                      # fallback: maximize step count
        for bb in _divisors_desc(bsz):
            steps = (bsz // bb) * q_steps
            if footprint(bb) <= vmem_budget and steps >= 4:
                block_b = bb
                break
        # prefer an even total step count (v7x megacore) when cheap to get
        if ((bsz // block_b) * q_steps) % 2 == 1 and block_b % 2 == 0:
            block_b //= 2
    return block_b, block_q, footprint(block_b)


# ---------------------------------- wrapper ---------------------------------- #
def scaled_dot_product_attention(q, k, v, mask=None, *, num_valid=None,
                                 temperature=None, block_b=None, block_q=None,
                                 approx_reciprocal=False,
                                 vmem_budget_bytes=16 * 1024 * 1024):
    """Pallas equivalent of ScaledDotProductAttention.forward (eval mode).

    q (bsz, len_q, d_k), k (bsz, len_k, d_k), v (bsz, len_k, d_v)
    mask: optional (nonzero/True == masked out); shapes (bsz, len_k),
          (bsz, 1, len_k) or (bsz, len_q, len_k).
    num_valid: optional (bsz,) int number of valid keys per batch element; when
          given the padding mask is built in-kernel (preferred; `mask` ignored).
    Returns (output (bsz, len_q, d_v), attn (bsz, len_q, len_k)), both in q.dtype.
    """
    bsz, len_q, d_k = q.shape
    kb, len_k, d_k2 = k.shape
    vb, len_v, d_v = v.shape
    assert kb == bsz and vb == bsz and len_k == len_v and d_k == d_k2

    if temperature is None:
        temperature = float(np.power(d_k, 0.5))          # MultiHeadAttention default
    inv_t = float(1.0 / temperature)
    io_bytes = jnp.dtype(q.dtype).itemsize

    # ---- dispatch on mask form ---------------------------------------------- #
    key_mask = full_mask = None
    if num_valid is not None:
        variant = "numvalid"
        num_valid = jnp.asarray(num_valid, jnp.int32).reshape(bsz)
        mask_bytes_per_batch = 0
    elif mask is None:
        variant = "none"
        mask_bytes_per_batch = 0
    else:
        m = jnp.asarray(mask)
        if m.ndim == 2:
            m = m[:, None, :]
        if m.shape[1] == 1:                              # key-padding mask
            variant = "key"
            key_mask = jnp.broadcast_to(m, (bsz, 1, len_k)).astype(jnp.int32)
            mask_bytes_per_batch = len_k * 4
        else:                                            # general q-dependent mask
            variant = "full"
            full_mask = jnp.broadcast_to(m, (bsz, len_q, len_k)).astype(jnp.int8)
            mask_bytes_per_batch = len_q * len_k

    block_b, block_q, vmem_estimate = _pick_blocks(
        bsz, len_q, len_k, d_k, d_v, io_bytes, mask_bytes_per_batch,
        block_b, block_q, vmem_budget_bytes)
    assert bsz % block_b == 0 and len_q % block_q == 0
    grid = (bsz // block_b, len_q // block_q)

    def qo_map(b, qi, *_):
        return (b, qi, 0)

    def kv_map(b, qi, *_):                               # constant in qi -> DMA skipped
        return (b, 0, 0)

    q_spec = pl.BlockSpec((block_b, block_q, d_k), qo_map)
    k_spec = pl.BlockSpec((block_b, len_k, d_k), kv_map)
    v_spec = pl.BlockSpec((block_b, len_k, d_v), kv_map)
    out_specs = (pl.BlockSpec((block_b, block_q, d_v), qo_map),
                 pl.BlockSpec((block_b, block_q, len_k), qo_map))

    in_specs = [q_spec, k_spec, v_spec]
    operands = [q, k, v]
    num_prefetch = 0
    if variant == "numvalid":
        kernel = functools.partial(_kernel_numvalid, inv_t, approx_reciprocal, block_b)
        num_prefetch = 1
        operands = [num_valid, q, k, v]
    elif variant == "none":
        kernel = functools.partial(_kernel_nomask, inv_t, approx_reciprocal)
    elif variant == "key":
        kernel = functools.partial(_kernel_keymask, inv_t, approx_reciprocal)
        in_specs = in_specs + [pl.BlockSpec((block_b, 1, len_k), kv_map)]
        operands = [q, k, v, key_mask]
    else:
        kernel = functools.partial(_kernel_fullmask, inv_t, approx_reciprocal)
        in_specs = in_specs + [pl.BlockSpec((block_b, block_q, len_k), qo_map)]
        operands = [q, k, v, full_mask]

    out_shape = (jax.ShapeDtypeStruct((bsz, len_q, d_v), q.dtype),
                 jax.ShapeDtypeStruct((bsz, len_q, len_k), q.dtype))

    bytes_accessed = ((q.size + k.size + v.size) * io_bytes
                      + bsz * len_q * (d_v + len_k) * io_bytes
                      + bsz * mask_bytes_per_batch)
    cost = pl.CostEstimate(flops=int(2 * bsz * len_q * len_k * (d_k + d_v)),
                           transcendentals=int(bsz * len_q * len_k),
                           bytes_accessed=int(bytes_accessed))

    vmem_limit = None
    if vmem_estimate > 24 * 1024 * 1024:
        vmem_limit = int(min(max(2 * vmem_estimate, 32 * 1024 * 1024), 128 * 1024 * 1024))

    grid_spec = pltpu.PrefetchScalarGridSpec(
        num_scalar_prefetch=num_prefetch,
        grid=grid,
        in_specs=in_specs,
        out_specs=out_specs)

    out, attn = pl.pallas_call(
        kernel,
        grid_spec=grid_spec,
        out_shape=out_shape,
        cost_estimate=cost,
        compiler_params=pltpu.CompilerParams(
            dimension_semantics=("parallel", "parallel"),
            vmem_limit_bytes=vmem_limit),
    )(*operands)
    return out, attn


# ---------------------------- pure-JAX reference ----------------------------- #
def sdpa_ref(q, k, v, mask, temperature):
    attn = jnp.einsum("bqd,bkd->bqk",
                      q.astype(jnp.float32), k.astype(jnp.float32)) / temperature
    if mask is not None:
        attn = jnp.where(mask, _MASK_VALUE, attn)
    attn = jax.nn.softmax(attn, axis=-1)
    out = jnp.einsum("bqk,bkd->bqd", attn, v.astype(jnp.float32))
    return out, attn


# ----------------------------------- main ------------------------------------ #
if __name__ == "__main__":
    # Shapes consistent with the relation-head usage:
    # q/k/v are (bsz*n_head, padded_num_boxes, per-head dim).
    bsz, len_q, len_k, d_k, d_v = 8, 128, 128, 64, 64
    temperature = float(np.power(d_k, 0.5))

    key = jax.random.PRNGKey(0)
    kq, kk, kv = jax.random.split(key, 3)
    q = jax.random.normal(kq, (bsz, len_q, d_k), jnp.float32)
    k = jax.random.normal(kk, (bsz, len_k, d_k), jnp.float32)
    v = jax.random.normal(kv, (bsz, len_k, d_v), jnp.float32)

    # padding mask used by the relation-head transformer: key index >= num_valid_boxes
    num_valid = jnp.asarray([100, 72, 128, 35, 64, 128, 17, 96], jnp.int32)
    pad_mask = jnp.arange(len_k, dtype=jnp.int32)[None, :] >= num_valid[:, None]   # (bsz, Lk)
    full_mask = jnp.broadcast_to(pad_mask[:, None, :], (bsz, len_q, len_k))

    ref_out, ref_attn = sdpa_ref(q, k, v, full_mask, temperature)

    # 1) preferred path: mask rebuilt in-kernel from scalar-prefetched key counts
    out, attn = scaled_dot_product_attention(q, k, v, num_valid=num_valid,
                                             temperature=temperature)
    out, attn = jax.block_until_ready((out, attn))
    np.testing.assert_allclose(np.asarray(attn), np.asarray(ref_attn), rtol=2e-3, atol=2e-3)
    np.testing.assert_allclose(np.asarray(out), np.asarray(ref_out), rtol=2e-3, atol=2e-3)

    # 2) tensor mask path: tiny (bsz, Lk) key-padding mask broadcast inside the kernel
    out2, attn2 = scaled_dot_product_attention(q, k, v, mask=pad_mask,
                                               temperature=temperature)
    out2, attn2 = jax.block_until_ready((out2, attn2))
    np.testing.assert_allclose(np.asarray(attn2), np.asarray(ref_attn), rtol=2e-3, atol=2e-3)
    np.testing.assert_allclose(np.asarray(out2), np.asarray(ref_out), rtol=2e-3, atol=2e-3)

    # 3) mask=None path: dedicated kernel with no mask operand / no select
    out3, attn3 = scaled_dot_product_attention(q, k, v, temperature=temperature)
    out3, attn3 = jax.block_until_ready((out3, attn3))
    ref_out3, ref_attn3 = sdpa_ref(q, k, v, None, temperature)
    np.testing.assert_allclose(np.asarray(attn3), np.asarray(ref_attn3), rtol=2e-3, atol=2e-3)
    np.testing.assert_allclose(np.asarray(out3), np.asarray(ref_out3), rtol=2e-3, atol=2e-3)

    # 4) bf16 inputs: bf16 MXU matmuls + bf16 attn/out writeback (halved HBM traffic)
    qb, kb_, vb_ = (x.astype(jnp.bfloat16) for x in (q, k, v))
    out4, attn4 = scaled_dot_product_attention(qb, kb_, vb_, num_valid=num_valid,
                                               temperature=temperature)
    out4, attn4 = jax.block_until_ready((out4, attn4))
    ref_out4, ref_attn4 = sdpa_ref(qb, kb_, vb_, full_mask, temperature)
    np.testing.assert_allclose(np.asarray(attn4.astype(jnp.float32)),
                               np.asarray(ref_attn4), rtol=2e-2, atol=2e-2)
    np.testing.assert_allclose(np.asarray(out4.astype(jnp.float32)),
                               np.asarray(ref_out4), rtol=2e-2, atol=2e-2)

    print("KERNEL_OK")
</pallas_src>

<mosaic_0001>
module attributes {stable_mosaic.version = 11 : i64} {
  func.func @_kernel_numvalid(%arg0: i32, %arg1: i32, %arg2: memref<8xi32, #tpu.memory_space<smem>>, %arg3: memref<2x128x64xf32, #tpu.memory_space<vmem>>, %arg4: memref<2x128x64xf32, #tpu.memory_space<vmem>>, %arg5: memref<2x128x64xf32, #tpu.memory_space<vmem>>, %arg6: memref<2x128x64xf32, #tpu.memory_space<vmem>>, %arg7: memref<2x128x128xf32, #tpu.memory_space<vmem>>) attributes {dimension_semantics = [#tpu.dimension_semantics<parallel>, #tpu.dimension_semantics<parallel>], iteration_bounds = array<i64: 4, 1>, scalar_prefetch = 1 : i64, scratch_operands = 0 : i64, tpu.core_type = #tpu.core_type<tc>, window_params = [{transform_indices = @transform_0, window_bounds = array<i64: 2, 128, 64>}, {transform_indices = @transform_1, window_bounds = array<i64: 2, 128, 64>}, {transform_indices = @transform_2, window_bounds = array<i64: 2, 128, 64>}, {transform_indices = @transform_3, window_bounds = array<i64: 2, 128, 64>}, {transform_indices = @transform_4, window_bounds = array<i64: 2, 128, 128>}]} {
    %c0 = arith.constant 0 : index
    %c0_0 = arith.constant 0 : index
    %c0_1 = arith.constant 0 : index
    %0 = vector.load %arg3[%c0, %c0_0, %c0_1] : memref<2x128x64xf32, #tpu.memory_space<vmem>>, vector<2x128x64xf32>
    %c0_2 = arith.constant 0 : index
    %c0_3 = arith.constant 0 : index
    %c0_4 = arith.constant 0 : index
    %1 = vector.load %arg4[%c0_2, %c0_3, %c0_4] : memref<2x128x64xf32, #tpu.memory_space<vmem>>, vector<2x128x64xf32>
    "tpu.trace_start"() <{level = 10 : i32, message = "bqd,bkd->bqk"}> : () -> ()
    %cst = arith.constant dense<0.000000e+00> : vector<2x128x128xf32>
    %2 = tpu.matmul %0, %1, %cst {dimension_numbers = #tpu.dot_dimension_numbers<[2], [2], [1], [1], [0, 0, 0, 1, 1, 1], [0], [0]>} : vector<2x128x64xf32>, vector<2x128x64xf32>, vector<2x128x128xf32> -> vector<2x128x128xf32>
    "tpu.trace_stop"() : () -> ()
    %cst_5 = arith.constant 1.250000e-01 : f32
    %3 = vector.broadcast %cst_5 : f32 to vector<2x128x128xf32>
    %4 = arith.mulf %2, %3 : vector<2x128x128xf32>
    %c2_i32 = arith.constant 2 : i32
    %5 = arith.muli %arg0, %c2_i32 : i32
    %6 = tpu.iota {dimensions = array<i32: 1>} : vector<128x128xi32>
    %c0_i32 = arith.constant 0 : i32
    %7 = arith.addi %5, %c0_i32 : i32
    %8 = arith.index_cast %7 : i32 to index
    %9 = memref.load %arg2[%8] : memref<8xi32, #tpu.memory_space<smem>>
    %10 = vector.broadcast %9 : i32 to vector<128x128xi32>
    %11 = arith.cmpi sge, %6, %10 : vector<128x128xi32>
    %12 = vector.extract_strided_slice %4 {offsets = [0, 0, 0], sizes = [1, 128, 128], strides = [1, 1, 1]} : vector<2x128x128xf32> to vector<1x128x128xf32>
    %13 = vector.shape_cast %12 : vector<1x128x128xf32> to vector<128x128xf32>
    %cst_6 = arith.constant -1.000000e+30 : f32
    %14 = vector.broadcast %cst_6 : f32 to vector<128x128xf32>
    %15 = arith.select %11, %14, %13 : vector<128x128xi1>, vector<128x128xf32>
    %c1_i32 = arith.constant 1 : i32
    %16 = arith.addi %5, %c1_i32 : i32
    %17 = arith.index_cast %16 : i32 to index
    %18 = memref.load %arg2[%17] : memref<8xi32, #tpu.memory_space<smem>>
    %19 = vector.broadcast %18 : i32 to vector<128x128xi32>
    %20 = arith.cmpi sge, %6, %19 : vector<128x128xi32>
    %21 = vector.extract_strided_slice %4 {offsets = [1, 0, 0], sizes = [1, 128, 128], strides = [1, 1, 1]} : vector<2x128x128xf32> to vector<1x128x128xf32>
    %22 = vector.shape_cast %21 : vector<1x128x128xf32> to vector<128x128xf32>
    %cst_7 = arith.constant -1.000000e+30 : f32
    %23 = vector.broadcast %cst_7 : f32 to vector<128x128xf32>
    %24 = arith.select %20, %23, %22 : vector<128x128xi1>, vector<128x128xf32>
    %25 = vector.shape_cast %15 : vector<128x128xf32> to vector<1x128x128xf32>
    %26 = vector.shape_cast %24 : vector<128x128xf32> to vector<1x128x128xf32>
    %27 = tpu.concatenate %25, %26 in 0 : vector<1x128x128xf32>, vector<1x128x128xf32> -> vector<2x128x128xf32>
    %c0_8 = arith.constant 0 : index
    %c0_9 = arith.constant 0 : index
    %c0_10 = arith.constant 0 : index
    %28 = vector.load %arg5[%c0_8, %c0_9, %c0_10] : memref<2x128x64xf32, #tpu.memory_space<vmem>>, vector<2x128x64xf32>
    %cst_11 = arith.constant dense<0xFF800000> : vector<2x128xf32>
    %29 = vector.multi_reduction <maximumf>, %27, %cst_11 [2] : vector<2x128x128xf32> to vector<2x128xf32>
    %30 = vector.shape_cast %29 : vector<2x128xf32> to vector<2x128x1xf32>
    %31 = vector.broadcast %30 : vector<2x128x1xf32> to vector<2x128x128xf32>
    %32 = arith.subf %27, %31 : vector<2x128x128xf32>
    %33 = math.exp %32 : vector<2x128x128xf32>
    %cst_12 = arith.constant dense<0.000000e+00> : vector<2x128xf32>
    %34 = vector.multi_reduction <add>, %33, %cst_12 [2] : vector<2x128x128xf32> to vector<2x128xf32>
    %35 = vector.shape_cast %34 : vector<2x128xf32> to vector<2x128x1xf32>
    %36 = tpu.reciprocal %35 : vector<2x128x1xf32> -> vector<2x128x1xf32>
    %37 = vector.broadcast %36 : vector<2x128x1xf32> to vector<2x128x128xf32>
    %38 = arith.mulf %33, %37 : vector<2x128x128xf32>
    %c0_13 = arith.constant 0 : index
    %c0_14 = arith.constant 0 : index
    %c0_15 = arith.constant 0 : index
    %39 = vector.load %arg7[%c0_13, %c0_14, %c0_15] : memref<2x128x128xf32, #tpu.memory_space<vmem>>, vector<2x128x128xf32>
    tpu.vector_store %arg7[%c0_13, %c0_14, %c0_15], %38 {strides = array<i32>} : memref<2x128x128xf32, #tpu.memory_space<vmem>>, vector<2x128x128xf32>,
    "tpu.trace_start"() <{level = 10 : i32, message = "bqk,bkd->bqd"}> : () -> ()
    %cst_16 = arith.constant dense<0.000000e+00> : vector<2x128x64xf32>
    %40 = tpu.matmul %38, %28, %cst_16 {dimension_numbers = #tpu.dot_dimension_numbers<[2], [1], [1], [2], [0, 0, 0, 1, 1, 2], [0], [0]>} : vector<2x128x128xf32>, vector<2x128x64xf32>, vector<2x128x64xf32> -> vector<2x128x64xf32>
    "tpu.trace_stop"() : () -> ()
    %c0_17 = arith.constant 0 : index
    %c0_18 = arith.constant 0 : index
    %c0_19 = arith.constant 0 : index
    %41 = vector.load %arg6[%c0_17, %c0_18, %c0_19] : memref<2x128x64xf32, #tpu.memory_space<vmem>>, vector<2x128x64xf32>
    tpu.vector_store %arg6[%c0_17, %c0_18, %c0_19], %40 {strides = array<i32>} : memref<2x128x64xf32, #tpu.memory_space<vmem>>, vector<2x128x64xf32>,
    return
  }
  func.func @transform_0(%arg0: i32, %arg1: i32, %arg2: memref<8xi32, #tpu.memory_space<smem>>) -> (i32, i32, i32) {
    %c0_i32 = arith.constant 0 : i32
    %c0_i32_0 = arith.constant 0 : i32
    return %arg0, %arg1, %c0_i32 : i32, i32, i32
  }
  func.func @transform_1(%arg0: i32, %arg1: i32, %arg2: memref<8xi32, #tpu.memory_space<smem>>) -> (i32, i32, i32) {
    %c0_i32 = arith.constant 0 : i32
    %c0_i32_0 = arith.constant 0 : i32
    %c0_i32_1 = arith.constant 0 : i32
    return %arg0, %c0_i32, %c0_i32_0 : i32, i32, i32
  }
  func.func @transform_2(%arg0: i32, %arg1: i32, %arg2: memref<8xi32, #tpu.memory_space<smem>>) -> (i32, i32, i32) {
    %c0_i32 = arith.constant 0 : i32
    %c0_i32_0 = arith.constant 0 : i32
    %c0_i32_1 = arith.constant 0 : i32
    return %arg0, %c0_i32, %c0_i32_0 : i32, i32, i32
  }
  func.func @transform_3(%arg0: i32, %arg1: i32, %arg2: memref<8xi32, #tpu.memory_space<smem>>) -> (i32, i32, i32) {
    %c0_i32 = arith.constant 0 : i32
    %c0_i32_0 = arith.constant 0 : i32
    return %arg0, %arg1, %c0_i32 : i32, i32, i32
  }
  func.func @transform_4(%arg0: i32, %arg1: i32, %arg2: memref<8xi32, #tpu.memory_space<smem>>) -> (i32, i32, i32) {
    %c0_i32 = arith.constant 0 : i32
    %c0_i32_0 = arith.constant 0 : i32
    return %arg0, %arg1, %c0_i32 : i32, i32, i32
  }
}

</mosaic_0001>

<bundles_post_ra>
// kernel: tpu_custom_call.1
= control target key start
LH: loop header
LB: loop body
LE: loop exit
PB: predicated region body
PF: predicated region fallthrough
CT: control target
= control target key end

     0   :  { %s3481_s0 = inlined_call_operand.vmem [shape: s32[8], index: 0, kind: input, shape index: {}]   ;;  %s3482_s1 = inlined_call_operand.vmem [shape: f32[8,128,64], index: 1, kind: input, shape index: {}]   ;;  %s3483_s2 = inlined_call_operand.vmem [shape: f32[8,128,64], index: 2, kind: input, shape index: {}]   ;;  %s3484_s3 = inlined_call_operand.vmem [shape: f32[8,128,64], index: 3, kind: input, shape index: {}]   ;;  %s3485_s4 = inlined_call_operand.vmem [shape: f32[8,128,64], index: 4, kind: output, shape index: {0}]   ;;  %s3486_s5 = inlined_call_operand.hbm [shape: f32[8,128,128], index: 5, kind: output, shape index: {1}]  }
   0x1   :  { %s11_s20 = sshll.u32 %s3481_s0, 4  ;;  %s12_s20 = int_to_ptr.vmem [resolvable:$true] %s11_s20 }
   0x2   :  { %s2578_s21 = scalar_lea.vmem %s12_s20, 16  ;;  %p2583_p1 = scmp.lt.s32.totalorder %s12_s20, %s12_s20 }
   0x3   :  { %p2579_p0 = scmp.ne.s32.totalorder %s12_s20, %s2578_s21  ;;  %p2584_p2 = scmp.lt.s32.totalorder %s2578_s21, %s2578_s21 }
   0x5   :  { %p2585_p3 = por %p2584_p2, %p2583_p1 }
   0x7   :  { %p2586_p4 = pnand %p2585_p3, %p2579_p0 }
   0x9   :  { %2589 = shalt.err (!%p2586_p4)  }
   0xa   :  { %s2672_s22 = smov [#allocation3]  }
   0xb   :  { %14 = dma.vmem_to_smem %s12_s20, 16, %s2672_s22, [#allocation2] }
   0xc   :  { %2642 = dma.done.wait [#allocation2], 16 }
   0xd   :  { %2643 = vsyncadd [#allocation2], 4294967280 }
   0xe   :  { %16 = sfence }
   0xf   :  { %17 = vsyncpa [#allocation5], 0 }
  0x10   :  { %19 = vsyncpa [#allocation5 + $0x1], 0  ;;  %s2709_s23 = smov 0   ;;  %s2711_s24 = smov 0  }
  0x11   :  { %s2713_s0 = smov 0   ;;  %s2715_s25 = smov 0  }
  0x12   :  { %s2717_s26 = smov 0   ;;  %s2719_s27 = smov 0  }
  0x13 LB: > { %s1785_s28 = sadd.s32 4294967295, %s2670_s27   ;;  %s1786_s29 = sadd.s32 4294967294, %s2670_s27   ;;  %s2670_s27 = sphi %s2719_s27, %s25_s27   ;;  %s2666_s26 = sphi %s2717_s26, %s3499_s26   ;;  %s2662_s25 = sphi %s2715_s25, %s3498_s25   ;;  %s2658_s0 = sphi %s2713_s0, %s3497_s0   ;;  %s2654_s24 = sphi %s2711_s24, %s3496_s24   ;;  %s2650_s23 = sphi %s2709_s23, %s3495_s23  }
  0x14   : > { %s37_s30 = sadd.s32 1, %s2666_s26  ;;  %s154_s6 = sadd.s32 1, %s2658_s0 }
  0x15   : > { %p39_p5 = scmp.ge.s32.totalorder %s37_s30, 4  ;;  %p164_p6 = scmp.ne.s32.totalorder %s2658_s0, %s2654_s24 }
  0x16   : > { %p165_p7 = scmp.eq.s32.totalorder %s1785_s28, 3  ;;  %p170_p8 = scmp.ne.s32.totalorder %s2654_s24, %s2650_s23 }
  0x17   : > { %s3501_s30 = smov (%p39_p5, %s37_s30), 0  ;;  %p171_p10 = scmp.eq.s32.totalorder %s1786_s29, 3 }
  0x18   : > { %p2749_p9 = por %p165_p7, %p164_p6  ;;  %s149_s8 = ssub.s32 %s2666_s26, %s3501_s30 }
  0x19   : > { %p1789_p11 = scmp.ge.s32.totalorder %s2670_s27, 1  ;;  %p152_p12 = scmp.eq.s32.totalorder %s149_s8, 0 }
  0x1a   : > { %p2756_p13 = por %p171_p10, %p170_p8  ;;  %p224_p0 = scmp.lt.s32.totalorder %s2670_s27, 5 }
  0x1b   : > { %s2762_s10 = scalar_select %p152_p12, %s2658_s0, %s154_s6  }
  0x1c   : > { %p225_p1 = pnand %p1789_p11, %p224_p0 }
  0x1d   : > { %s2765_s11 = sshll.u32 (!%p225_p1), %s2662_s25, 1  ;;  %vm381_vm0 = vcmask (!%p225_p1), 523264   ;;  %s274_s8 = sand.u32 (!%p225_p1), 1, %s2654_s24  }
  0x1e   : > { %228 = sbr.rel (%p225_p1) target bundleno = 914 (0x392), region = 32  ;;  %p279_p2 = scmp.lt.s32.totalorder (!%p225_p1), %s2765_s11, 7  ;;  %vm2779_vm1 = vmpackc.low (!%p225_p1), %vm381_vm0, %vm381_vm0 }
  0x1f   : > { %s918_s20 = sadd.s32 (!%p225_p1), 1, %s2765_s11  ;;  %s899_s21 = sld [smem:[#allocation3 + %s2765_s11]] (!%p225_p1) }
  0x20   : > { %s919_s22 = sld [smem:[#allocation3 + %s918_s20]] (!%p225_p1)  ;;  %s1879_s14 = sshll.u32 (!%p225_p1), %s2662_s25, 12 }
  0x21   : > { %s3359_s18 = scalar_lea.hbm (!%p225_p1), %s3486_s5, %s1879_s14  ;;  %s2673_s25 = smov (!%p225_p1), [#allocation4]  }
  0x25   : > { %s280_s12 = scalar_select %p279_p2, %s2765_s11, 7 }
  0x26   : > { %s1790_s11 = sshll.u32 %s274_s8, 8 }
  0x27   : > { %s2769_s13 = sshll.u32 %s280_s12, 7  ;;  %s3289_s12 = scalar_lea.vmem [#allocation4], %s1790_s11 }
  0x28   : > { %s2775_s16 = scalar_lea.vmem %s3483_s2, %s2769_s13  ;;  %s2811_s19 = scalar_lea.vmem %s3482_s1, %s2769_s13 }
  0x29   : > { %v349_v1 = vld [vmem:[%s2775_s16] sm:$0xff]  ;;  %v350_v2 = vld [vmem:[%s2775_s16 + $0x8] sm:$0xff]  ;;  %v351_v6 = vld [vmem:[%s2775_s16 + $0x10] sm:$0xff]  ;;  %s3123_s6 = scalar_lea.vmem %s3484_s3, %s2769_s13  ;;  %s1644_s15 = sshll.u32 %s3289_s12, 4  ;;  %s3361_s15 = int_to_ptr.vmem [resolvable:$true] %s1644_s15 }
  0x2a   : > { %v365_v3 = vld [vmem:[%s2775_s16 + $0x80] sm:$0xff]  ;;  %v2232_v4 = vpack.c.bf16 %v350_v2, %v349_v1  ;;  %v366_v5 = vld [vmem:[%s2775_s16 + $0x88] sm:$0xff]  ;;  %v352_v7 = vld [vmem:[%s2775_s16 + $0x18] sm:$0xff]  ;;  %s2590_s20 = scalar_lea.vmem %s3361_s15, 4096 }
  0x2b   : > { %v2280_v8 = vpack.c.bf16 %v366_v5, %v365_v3  ;;  %v2238_v9 = vpack.c.bf16 %v352_v7, %v351_v6  ;;  %v367_v10 = vld [vmem:[%s2775_s16 + $0x90] sm:$0xff]  ;;  %v368_v11 = vld [vmem:[%s2775_s16 + $0x98] sm:$0xff]  ;;  %v353_v13 = vld [vmem:[%s2775_s16 + $0x20] sm:$0xff]  ;;  %p2591_p3 = scmp.ne.s32.totalorder %s3361_s15, %s2590_s20 }
  0x2c   : > { %2234 = vmatprep.subr.msk.bf16.mxu0 %vm2779_vm1, %v2232_v4  ;;  %v2286_v12 = vpack.c.bf16 %v368_v11, %v367_v10  ;;  %v354_v14 = vld [vmem:[%s2775_s16 + $0x28] sm:$0xff]  ;;  %v369_v15 = vld [vmem:[%s2775_s16 + $0xa0] sm:$0xff]  ;;  %v355_v21 = vld [vmem:[%s2775_s16 + $0x30] sm:$0xff] }
  0x2d   : > { %2282 = vmatprep.subr.msk.bf16.mxu1 %vm2779_vm1, %v2280_v8  ;;  %2237 = vmatpush3.bf16.xpose.msk.msra.mxu0 %vm2779_vm1, %v2232_v4  ;;  %v370_v16 = vld [vmem:[%s2775_s16 + $0xa8] sm:$0xff]  ;;  %v2244_v17 = vpack.c.bf16 %v354_v14, %v353_v13  ;;  %v317_v19 = vld [vmem:[%s2811_s19] sm:$0xff]  ;;  %v356_v22 = vld [vmem:[%s2775_s16 + $0x38] sm:$0xff]  ;;  %p2592_p4 = pnand %p2591_p3, %p2749_p9 }
  0x2e   : > { %2285 = vmatpush3.bf16.xpose.msk.msra.mxu1 %vm2779_vm1, %v2280_v8  ;;  %2240 = vmatprep.subr.msk.bf16.mxu0 %vm2779_vm1, %v2238_v9  ;;  %v2292_v18 = vpack.c.bf16 %v370_v16, %v369_v15  ;;  %v333_v20 = vld [vmem:[%s2811_s19 + $0x80] sm:$0xff]  ;;  %v371_v23 = vld [vmem:[%s2775_s16 + $0xb0] sm:$0xff]  ;;  %v372_v24 = vld [vmem:[%s2775_s16 + $0xb8] sm:$0xff]  ;;  %v2250_v25 = vpack.c.bf16 %v356_v22, %v355_v21 }
  0x2f   : > { %2288 = vmatprep.subr.msk.bf16.mxu1 %vm2779_vm1, %v2286_v12  ;;  %2040 = vmatprep.mubr.msk.f32.mxu0 %vm381_vm0, %v317_v19  ;;  %v2298_v26 = vpack.c.bf16 %v372_v24, %v371_v23  ;;  %v357_v27 = vld [vmem:[%s2775_s16 + $0x40] sm:$0xff]  ;;  %v358_v28 = vld [vmem:[%s2775_s16 + $0x48] sm:$0xff]  ;;  %v359_v33 = vld [vmem:[%s2775_s16 + $0x50] sm:$0xff]  ;;  %v900_v19 = vstv %s899_s21  ;;  %p2593_p5 = pneg %p2592_p4  ;;  %s2594_s21 = sshll.u32 %s2673_s25, 4  ;;  %s2595_s21 = int_to_ptr.vmem [resolvable:$false] %s2594_s21 }
  0x30   : > { %2096 = vmatprep.mubr.msk.f32.mxu1 %vm381_vm0, %v333_v20  ;;  %v373_v29 = vld [vmem:[%s2775_s16 + $0xc0] sm:$0xff]  ;;  %v374_v30 = vld [vmem:[%s2775_s16 + $0xc8] sm:$0xff]  ;;  %v2256_v31 = vpack.c.bf16 %v358_v28, %v357_v27  ;;  %v360_v34 = vld [vmem:[%s2775_s16 + $0x58] sm:$0xff]  ;;  %v920_v20 = vstv %s919_s22  ;;  %s2596_s22 = scalar_lea.vmem %s2595_s21, 8192  ;;  %p2597_p6 = scmp.lt.s32.totalorder %s3361_s15, %s2595_s21 }
  0x31   : > { %v2304_v32 = vpack.c.bf16 %v374_v30, %v373_v29  ;;  %v375_v35 = vld [vmem:[%s2775_s16 + $0xd0] sm:$0xff]  ;;  %v376_v36 = vld [vmem:[%s2775_s16 + $0xd8] sm:$0xff]  ;;  %v2262_v37 = vpack.c.bf16 %v360_v34, %v359_v33  ;;  %v361_v39 = vld [vmem:[%s2775_s16 + $0x60] sm:$0xff]  ;;  %p2598_p7 = scmp.lt.s32.totalorder %s2596_s22, %s2590_s20 }
  0x32   : > { %v2310_v38 = vpack.c.bf16 %v376_v36, %v375_v35  ;;  %v362_v40 = vld [vmem:[%s2775_s16 + $0x68] sm:$0xff]  ;;  %v377_v41 = vld [vmem:[%s2775_s16 + $0xe0] sm:$0xff]  ;;  %v363_v45 = vld [vmem:[%s2775_s16 + $0x70] sm:$0xff] }
  0x33   : > { %v378_v42 = vld [vmem:[%s2775_s16 + $0xe8] sm:$0xff]  ;;  %v2268_v43 = vpack.c.bf16 %v362_v40, %v361_v39  ;;  %v364_v46 = vld [vmem:[%s2775_s16 + $0x78] sm:$0xff]  ;;  %v379_v47 = vld [vmem:[%s2775_s16 + $0xf0] sm:$0xff]  ;;  %p2599_p8 = por %p2598_p7, %p2597_p6 }
  0x34   : > { %v2316_v44 = vpack.c.bf16 %v378_v42, %v377_v41  ;;  %v380_v48 = vld [vmem:[%s2775_s16 + $0xf8] sm:$0xff]  ;;  %v2274_v49 = vpack.c.bf16 %v364_v46, %v363_v45  ;;  %v318_v51 = vld [vmem:[%s2811_s19 + $0x8] sm:$0xff]  ;;  %v319_v53 = vld [vmem:[%s2811_s19 + $0x10] sm:$0xff] }
  0x35   : > { %2243 = vmatpush3.bf16.xpose.msk.msra.mxu0 %vm2779_vm1, %v2238_v9  ;;  %v2322_v50 = vpack.c.bf16 %v380_v48, %v379_v47  ;;  %v334_v52 = vld [vmem:[%s2811_s19 + $0x88] sm:$0xff]  ;;  %v335_v54 = vld [vmem:[%s2811_s19 + $0x90] sm:$0xff]  ;;  %v320_v55 = vld [vmem:[%s2811_s19 + $0x18] sm:$0xff]  ;;  %p2600_p10 = pnand %p2599_p8, %p2593_p5 }
  0x36   : > { %2291 = vmatpush3.bf16.xpose.msk.msra.mxu1 %vm2779_vm1, %v2286_v12  ;;  %2246 = vmatprep.subr.msk.bf16.mxu0 %vm2779_vm1, %v2244_v17  ;;  %v336_v56 = vld [vmem:[%s2811_s19 + $0x98] sm:$0xff]  ;;  %v321_v57 = vld [vmem:[%s2811_s19 + $0x20] sm:$0xff]  ;;  %v322_v59 = vld [vmem:[%s2811_s19 + $0x28] sm:$0xff] }
  0x37   : > { %2294 = vmatprep.subr.msk.bf16.mxu1 %vm2779_vm1, %v2292_v18  ;;  %v337_v58 = vld [vmem:[%s2811_s19 + $0xa0] sm:$0xff]  ;;  %v338_v60 = vld [vmem:[%s2811_s19 + $0xa8] sm:$0xff]  ;;  %v323_v61 = vld [vmem:[%s2811_s19 + $0x30] sm:$0xff] }
  0x38   : > { %v339_v62 = vld [vmem:[%s2811_s19 + $0xb0] sm:$0xff]  ;;  %v324_v63 = vld [vmem:[%s2811_s19 + $0x38] sm:$0xff]  ;;  %v325_v1 = vld [vmem:[%s2811_s19 + $0x40] sm:$0xff] }
  0x39   : > { %v340_v0 = vld [vmem:[%s2811_s19 + $0xb8] sm:$0xff]  ;;  %v341_v2 = vld [vmem:[%s2811_s19 + $0xc0] sm:$0xff]  ;;  %v326_v3 = vld [vmem:[%s2811_s19 + $0x48] sm:$0xff] }
  0x3a   : > { %v342_v4 = vld [vmem:[%s2811_s19 + $0xc8] sm:$0xff]  ;;  %v327_v5 = vld [vmem:[%s2811_s19 + $0x50] sm:$0xff]  ;;  %v328_v7 = vld [vmem:[%s2811_s19 + $0x58] sm:$0xff] }
  0x3b   : > { %v343_v6 = vld [vmem:[%s2811_s19 + $0xd0] sm:$0xff]  ;;  %v344_v8 = vld [vmem:[%s2811_s19 + $0xd8] sm:$0xff]  ;;  %v329_v9 = vld [vmem:[%s2811_s19 + $0x60] sm:$0xff] }
  0x3c   : > { %v345_v10 = vld [vmem:[%s2811_s19 + $0xe0] sm:$0xff]  ;;  %v330_v11 = vld [vmem:[%s2811_s19 + $0x68] sm:$0xff]  ;;  %v331_v13 = vld [vmem:[%s2811_s19 + $0x70] sm:$0xff] }
  0x3d   : > { %2249 = vmatpush3.bf16.xpose.msk.msra.mxu0 %vm2779_vm1, %v2244_v17  ;;  %v346_v12 = vld [vmem:[%s2811_s19 + $0xe8] sm:$0xff]  ;;  %v347_v14 = vld [vmem:[%s2811_s19 + $0xf0] sm:$0xff]  ;;  %v332_v15 = vld [vmem:[%s2811_s19 + $0x78] sm:$0xff]  ;;  %v897_v17 = vlaneseq }
  0x3e   : > { %2297 = vmatpush3.bf16.xpose.msk.msra.mxu1 %vm2779_vm1, %v2292_v18  ;;  %2252 = vmatprep.subr.msk.bf16.mxu0 %vm2779_vm1, %v2250_v25  ;;  %v348_v16 = vld [vmem:[%s2811_s19 + $0xf8] sm:$0xff]  ;;  %v938_v22 = vld [vmem:[%s3123_s6] sm:$0xff]  ;;  %s3365_s19 = scalar_lea.sflag [#allocation5], %s274_s8 }
  0x3f   : > { %2300 = vmatprep.subr.msk.bf16.mxu1 %vm2779_vm1, %v2298_v26  ;;  %v898_v18 = vand.u32 127, %v897_v17 }
  0x41   : > { %vm2951_vm2 = vcmp.ge.s32.totalorder %v898_v18, %v900_v19  ;;  %vm2955_vm3 = vcmp.ge.s32.totalorder %v898_v18, %v920_v20 }
  0x45   : > { %2255 = vmatpush3.bf16.xpose.msk.msra.mxu0 %vm2779_vm1, %v2250_v25 }
  0x46   : > { %2303 = vmatpush3.bf16.xpose.msk.msra.mxu1 %vm2779_vm1, %v2298_v26  ;;  %2258 = vmatprep.subr.msk.bf16.mxu0 %vm2779_vm1, %v2256_v31  ;;  %v939_v26 = vld [vmem:[%s3123_s6 + $0x8] sm:$0xff] }
  0x47   : > { %2306 = vmatprep.subr.msk.bf16.mxu1 %vm2779_vm1, %v2304_v32 }
  0x4d   : > { %2261 = vmatpush3.bf16.xpose.msk.msra.mxu0 %vm2779_vm1, %v2256_v31 }
  0x4e   : > { %2309 = vmatpush3.bf16.xpose.msk.msra.mxu1 %vm2779_vm1, %v2304_v32  ;;  %2264 = vmatprep.subr.msk.bf16.mxu0 %vm2779_vm1, %v2262_v37 }
  0x4f   : > { %2312 = vmatprep.subr.msk.bf16.mxu1 %vm2779_vm1, %v2310_v38 }
  0x55   : > { %2267 = vmatpush3.bf16.xpose.msk.msra.mxu0 %vm2779_vm1, %v2262_v37 }
  0x56   : > { %2315 = vmatpush3.bf16.xpose.msk.msra.mxu1 %vm2779_vm1, %v2310_v38  ;;  %2270 = vmatprep.subr.msk.bf16.mxu0 %vm2779_vm1, %v2268_v43 }
  0x57   : > { %2318 = vmatprep.subr.msk.bf16.mxu1 %vm2779_vm1, %v2316_v44 }
  0x5d   : > { %2273 = vmatpush3.bf16.xpose.msk.msra.mxu0 %vm2779_vm1, %v2268_v43 }
  0x5e   : > { %2321 = vmatpush3.bf16.xpose.msk.msra.mxu1 %vm2779_vm1, %v2316_v44  ;;  %2276 = vmatprep.subr.msk.bf16.mxu0 %vm2779_vm1, %v2274_v49 }
  0x5f   : > { %2324 = vmatprep.subr.msk.bf16.mxu1 %vm2779_vm1, %v2322_v50 }
  0x65   : > { %2279 = vmatpush3.bf16.xpose.msk.msra.mxu0 %vm2779_vm1, %v2274_v49 }
  0x66   : > { %2327 = vmatpush3.bf16.xpose.msk.msra.mxu1 %vm2779_vm1, %v2322_v50 }
  0x6c   : > { %2041 = vmatmul.mubr.msk.f32.vlgmr.msra.gmra.mrb[0].mxu0 %vm381_vm0, %v318_v51 }
  0x6d   : > { %2097 = vmatmul.mubr.msk.f32.vlgmr.msra.gmra.mrb[0].mxu1 %vm381_vm0, %v334_v52  ;;  %2043 = vmatprep.mubr.msk.f32.mxu0 %vm381_vm0, %v319_v53 }
  0x6e   : > { %2099 = vmatprep.mubr.msk.f32.mxu1 %vm381_vm0, %v335_v54 }
  0x70   : > { %2044 = vmatmul.mubr.msk.f32.gmra.mrb[2].mxu0 %vm381_vm0, %v320_v55 }
  0x71   : > { %2100 = vmatmul.mubr.msk.f32.gmra.mrb[2].mxu1 %vm381_vm0, %v336_v56  ;;  %2046 = vmatprep.mubr.msk.f32.mxu0 %vm381_vm0, %v321_v57 }
  0x72   : > { %2102 = vmatprep.mubr.msk.f32.mxu1 %vm381_vm0, %v337_v58 }
  0x74   : > { %2047 = vmatmul.mubr.msk.f32.gmra.mrb[4].mxu0 %vm381_vm0, %v322_v59 }
  0x75   : > { %2103 = vmatmul.mubr.msk.f32.gmra.mrb[4].mxu1 %vm381_vm0, %v338_v60  ;;  %2049 = vmatprep.mubr.msk.f32.mxu0 %vm381_vm0, %v323_v61 }
  0x76   : > { %2105 = vmatprep.mubr.msk.f32.mxu1 %vm381_vm0, %v339_v62 }
  0x78   : > { %2050 = vmatmul.mubr.msk.f32.gmra.mrb[6].mxu0 %vm381_vm0, %v324_v63 }
  0x79   : > { %2106 = vmatmul.mubr.msk.f32.gmra.mrb[6].mxu1 %vm381_vm0, %v340_v0  ;;  %2052 = vmatprep.mubr.msk.f32.mxu0 %vm381_vm0, %v325_v1 }
  0x7a   : > { %2108 = vmatprep.mubr.msk.f32.mxu1 %vm381_vm0, %v341_v2 }
  0x7c   : > { %2053 = vmatmul.mubr.msk.f32.gmra.mrb[8].mxu0 %vm381_vm0, %v326_v3 }
  0x7d   : > { %2109 = vmatmul.mubr.msk.f32.gmra.mrb[8].mxu1 %vm381_vm0, %v342_v4  ;;  %2055 = vmatprep.mubr.msk.f32.mxu0 %vm381_vm0, %v327_v5 }
  0x7e   : > { %2111 = vmatprep.mubr.msk.f32.mxu1 %vm381_vm0, %v343_v6 }
  0x80   : > { %2056 = vmatmul.mubr.msk.f32.gmra.mrb[10].mxu0 %vm381_vm0, %v328_v7 }
  0x81   : > { %2112 = vmatmul.mubr.msk.f32.gmra.mrb[10].mxu1 %vm381_vm0, %v344_v8  ;;  %2058 = vmatprep.mubr.msk.f32.mxu0 %vm381_vm0, %v329_v9 }
  0x82   : > { %2114 = vmatprep.mubr.msk.f32.mxu1 %vm381_vm0, %v345_v10 }
  0x84   : > { %2059 = vmatmul.mubr.msk.f32.gmra.mrb[12].mxu0 %vm381_vm0, %v330_v11 }
  0x85   : > { %2115 = vmatmul.mubr.msk.f32.gmra.mrb[12].mxu1 %vm381_vm0, %v346_v12  ;;  %2061 = vmatprep.mubr.msk.f32.mxu0 %vm381_vm0, %v331_v13 }
  0x86   : > { %2117 = vmatprep.mubr.msk.f32.mxu1 %vm381_vm0, %v347_v14 }
  0x88   : > { %2062 = vmatmul.mubr.msk.f32.gmra.mrb[14].mxu0 %vm381_vm0, %v332_v15 }
  0x89   : > { %2118 = vmatmul.mubr.msk.f32.gmra.mrb[14].mxu1 %vm381_vm0, %v348_v16 }
 0x13f   : > { %v2042_v21 = vpop.f32.mrb[0].mxu0 }
 0x140   : > { %v865_v23 = vmul.f32 0.125, %v2042_v21  ;;  %v2098_v24 = vpop.f32.mrb[0].mxu1  ;;  %v544_v25 = vpop.f32.mrb[1].mxu0 }
 0x141   : > { %v881_v27 = vmul.f32 0.125, %v2098_v24  ;;  %v785_v28 = vpop.f32.mrb[1].mxu1  ;;  %v864_v29 = vmul.f32 0.125, %v544_v25 }
 0x142   : > { %v880_v30 = vmul.f32 0.125, %v785_v28  ;;  %v2961_v31 = vsel %vm2951_vm2, -1e+30, %v865_v23 }
 0x143   : > { %v2965_v32 = vsel %vm2955_vm3, -1e+30, %v881_v27  ;;  %972 = vmax.xlane.f32.xlu0 %v2961_v31  ;;  %v2045_v33 = vpop.f32.mrb[2].mxu0  ;;  %v2975_v40 = vsel %vm2951_vm2, -1e+30, %v864_v29 }
 0x144   : > { %1004 = vmax.xlane.f32.xlu1 %v2965_v32  ;;  %v554_v34 = vpop.f32.mrb[3].mxu0  ;;  %v2101_v35 = vpop.f32.mrb[2].mxu1  ;;  %v867_v36 = vmul.f32 0.125, %v2045_v33  ;;  %v2971_v37 = vsel %vm2955_vm3, -1e+30, %v880_v30 }
 0x145   : > { %v866_v38 = vmul.f32 0.125, %v554_v34  ;;  %v795_v39 = vpop.f32.mrb[3].mxu1  ;;  %v883_v46 = vmul.f32 0.125, %v2101_v35 }
 0x146   : > { %v882_v42 = vmul.f32 0.125, %v795_v39  ;;  %v2985_v47 = vsel %vm2951_vm2, -1e+30, %v867_v36 }
 0x147   : > { %970 = vmax.xlane.f32.xlu0 %v2975_v40  ;;  %v2048_v41 = vpop.f32.mrb[4].mxu0  ;;  %v2981_v43 = vsel %vm2951_vm2, -1e+30, %v866_v38  ;;  %v2995_v55 = vsel %vm2955_vm3, -1e+30, %v883_v46 }
 0x148   : > { %1002 = vmax.xlane.f32.xlu1 %v2971_v37  ;;  %v564_v44 = vpop.f32.mrb[5].mxu0  ;;  %v2104_v45 = vpop.f32.mrb[4].mxu1  ;;  %v2991_v50 = vsel %vm2955_vm3, -1e+30, %v882_v42  ;;  %v869_v54 = vmul.f32 0.125, %v2048_v41 }
 0x149   : > { %v805_v48 = vpop.f32.mrb[5].mxu1  ;;  %v868_v51 = vmul.f32 0.125, %v564_v44  ;;  %v885_v62 = vmul.f32 0.125, %v2104_v45 }
 0x14a   : > { %v884_v58 = vmul.f32 0.125, %v805_v48  ;;  %v3005_v63 = vsel %vm2951_vm2, -1e+30, %v869_v54 }
 0x14b   : > { %974 = vmax.xlane.f32.xlu0 %v2981_v43  ;;  %v2051_v49 = vpop.f32.mrb[6].mxu0  ;;  %v3001_v59 = vsel %vm2951_vm2, -1e+30, %v868_v51  ;;  %v3015_v7 = vsel %vm2955_vm3, -1e+30, %v885_v62 }
 0x14c   : > { %976 = vmax.xlane.f32.xlu1 %v2985_v47  ;;  %v574_v52 = vpop.f32.mrb[7].mxu0  ;;  %v2107_v53 = vpop.f32.mrb[6].mxu1  ;;  %v3011_v2 = vsel %vm2955_vm3, -1e+30, %v884_v58  ;;  %v871_v6 = vmul.f32 0.125, %v2051_v49 }
 0x14d   : > { %v815_v56 = vpop.f32.mrb[7].mxu1  ;;  %v870_v3 = vmul.f32 0.125, %v574_v52  ;;  %v887_v14 = vmul.f32 0.125, %v2107_v53 }
 0x14e   : > { %v886_v10 = vmul.f32 0.125, %v815_v56  ;;  %v3025_v15 = vsel %vm2951_vm2, -1e+30, %v871_v6  ;;  %v941_v6 = vld [vmem:[%s3123_s6 + $0x18] sm:$0xff] }
 0x14f   : > { %1006 = vmax.xlane.f32.xlu0 %v2991_v50  ;;  %v2054_v57 = vpop.f32.mrb[8].mxu0  ;;  %v3021_v11 = vsel %vm2951_vm2, -1e+30, %v870_v3  ;;  %v3035_v24 = vsel %vm2955_vm3, -1e+30, %v887_v14  ;;  %v943_v14 = vld [vmem:[%s3123_s6 + $0x28] sm:$0xff] }
 0x150   : > { %1008 = vmax.xlane.f32.xlu1 %v2995_v55  ;;  %v584_v60 = vpop.f32.mrb[9].mxu0  ;;  %v2110_v61 = vpop.f32.mrb[8].mxu1  ;;  %v3031_v18 = vsel %vm2955_vm3, -1e+30, %v886_v10  ;;  %v873_v23 = vmul.f32 0.125, %v2054_v57 }
 0x151   : > { %v825_v0 = vpop.f32.mrb[9].mxu1  ;;  %v872_v19 = vmul.f32 0.125, %v584_v60  ;;  %v889_v29 = vmul.f32 0.125, %v2110_v61 }
 0x152   : > { %v888_v27 = vmul.f32 0.125, %v825_v0  ;;  %v3045_v30 = vsel %vm2951_vm2, -1e+30, %v873_v23 }
 0x153   : > { %978 = vmax.xlane.f32.xlu0 %v3001_v59  ;;  %v2057_v1 = vpop.f32.mrb[10].mxu0  ;;  %v3041_v28 = vsel %vm2951_vm2, -1e+30, %v872_v19  ;;  %v3055_v36 = vsel %vm2955_vm3, -1e+30, %v889_v29 }
 0x154   : > { %980 = vmax.xlane.f32.xlu1 %v3005_v63  ;;  %v594_v4 = vpop.f32.mrb[11].mxu0  ;;  %v2113_v5 = vpop.f32.mrb[10].mxu1  ;;  %v3051_v33 = vsel %vm2955_vm3, -1e+30, %v888_v27  ;;  %v875_v35 = vmul.f32 0.125, %v2057_v1  ;;  %v945_v27 = vld [vmem:[%s3123_s6 + $0x38] sm:$0xff] }
 0x155   : > { %v835_v8 = vpop.f32.mrb[11].mxu1  ;;  %v874_v34 = vmul.f32 0.125, %v594_v4  ;;  %v891_v41 = vmul.f32 0.125, %v2113_v5  ;;  %v940_v4 = vld [vmem:[%s3123_s6 + $0x10] sm:$0xff]  ;;  %v2328_v5 = vpack.c.bf16 %v939_v26, %v938_v22 }
 0x156   : > { %v890_v38 = vmul.f32 0.125, %v835_v8  ;;  %v3065_v42 = vsel %vm2951_vm2, -1e+30, %v875_v35  ;;  %v954_v8 = vld [vmem:[%s3123_s6 + $0x80] sm:$0xff]  ;;  %v2332_v10 = vpack.c.bf16 %v941_v6, %v940_v4 }
 0x157   : > { %1010 = vmax.xlane.f32.xlu0 %v3011_v2  ;;  %v2060_v9 = vpop.f32.mrb[12].mxu0  ;;  %v3061_v39 = vsel %vm2951_vm2, -1e+30, %v874_v34  ;;  %v3075_v48 = vsel %vm2955_vm3, -1e+30, %v891_v41  ;;  %2329 = vmatprep.subr.bf16.mxu0 %v2328_v5 }
 0x158   : > { %1012 = vmax.xlane.f32.xlu1 %v3015_v7  ;;  %v604_v12 = vpop.f32.mrb[13].mxu0  ;;  %v2116_v13 = vpop.f32.mrb[12].mxu1  ;;  %v3071_v44 = vsel %vm2955_vm3, -1e+30, %v890_v38  ;;  %v877_v46 = vmul.f32 0.125, %v2060_v9  ;;  %v955_v9 = vld [vmem:[%s3123_s6 + $0x88] sm:$0xff]  ;;  %2331 = vmatpush3.bf16.msra.mxu0 %v2328_v5 }
 0x159   : > { %v845_v16 = vpop.f32.mrb[13].mxu1  ;;  %v876_v45 = vmul.f32 0.125, %v604_v12  ;;  %v893_v52 = vmul.f32 0.125, %v2116_v13  ;;  %v2360_v12 = vpack.c.bf16 %v955_v9, %v954_v8  ;;  %v942_v13 = vld [vmem:[%s3123_s6 + $0x20] sm:$0xff]  ;;  %2333 = vmatprep.subr.bf16.mxu0 %v2332_v10 }
 0x15a   : > { %v892_v49 = vmul.f32 0.125, %v845_v16  ;;  %v3085_v53 = vsel %vm2951_vm2, -1e+30, %v877_v46  ;;  %v956_v16 = vld [vmem:[%s3123_s6 + $0x90] sm:$0xff]  ;;  %v2336_v23 = vpack.c.bf16 %v943_v14, %v942_v13 }
 0x15b   : > { %982 = vmax.xlane.f32.xlu0 %v3021_v11  ;;  %v2063_v17 = vpop.f32.mrb[14].mxu0  ;;  %v3081_v51 = vsel %vm2951_vm2, -1e+30, %v876_v45  ;;  %v3095_v58 = vsel %vm2955_vm3, -1e+30, %v893_v52  ;;  %2361 = vmatprep.subr.bf16.mxu1 %v2360_v12 }
 0x15c   : > { %984 = vmax.xlane.f32.xlu1 %v3025_v15  ;;  %v614_v20 = vpop.f32.mrb[15].mxu0  ;;  %v2119_v21 = vpop.f32.mrb[14].mxu1  ;;  %v3091_v54 = vsel %vm2955_vm3, -1e+30, %v892_v49  ;;  %v879_v57 = vmul.f32 0.125, %v2063_v17  ;;  %v957_v17 = vld [vmem:[%s3123_s6 + $0x98] sm:$0xff]  ;;  %2363 = vmatpush3.bf16.msra.mxu1 %v2360_v12 }
 0x15d   : > { %v855_v25 = vpop.f32.mrb[15].mxu1  ;;  %v878_v56 = vmul.f32 0.125, %v614_v20  ;;  %v895_v62 = vmul.f32 0.125, %v2119_v21  ;;  %v2364_v19 = vpack.c.bf16 %v957_v17, %v956_v16  ;;  %v958_v20 = vld [vmem:[%s3123_s6 + $0xa0] sm:$0xff]  ;;  %v959_v21 = vld [vmem:[%s3123_s6 + $0xa8] sm:$0xff]  ;;  %2335 = vmatpush3.bf16.msra.mxu0 %v2332_v10 }
 0x15e   : > { %v894_v60 = vmul.f32 0.125, %v855_v25  ;;  %v3105_v0 = vsel %vm2951_vm2, -1e+30, %v879_v57  ;;  %v944_v25 = vld [vmem:[%s3123_s6 + $0x30] sm:$0xff]  ;;  %v2368_v29 = vpack.c.bf16 %v959_v21, %v958_v20  ;;  %2337 = vmatprep.subr.bf16.mxu0 %v2336_v23 }
 0x15f   : > { %1014 = vmax.xlane.f32.xlu0 %v3031_v18  ;;  %v3101_v61 = vsel %vm2951_vm2, -1e+30, %v878_v56  ;;  %v3115_v3 = vsel %vm2955_vm3, -1e+30, %v895_v62  ;;  %2365 = vmatprep.subr.bf16.mxu1 %v2364_v19  ;;  %v2340_v34 = vpack.c.bf16 %v945_v27, %v944_v25 }
 0x160   : > { %1016 = vmax.xlane.f32.xlu1 %v3035_v24  ;;  %v3111_v1 = vsel %vm2955_vm3, -1e+30, %v894_v60  ;;  %2367 = vmatpush3.bf16.msra.mxu1 %v2364_v19 }
 0x161   : > { %2369 = vmatprep.subr.bf16.mxu1 %v2368_v29  ;;  %2339 = vmatpush3.bf16.msra.mxu0 %v2336_v23 }
 0x162   : > { %2341 = vmatprep.subr.bf16.mxu0 %v2340_v34 }
 0x163   : > { %986 = vmax.xlane.f32.xlu0 %v3041_v28 }
 0x164   : > { %988 = vmax.xlane.f32.xlu1 %v3045_v30  ;;  %2371 = vmatpush3.bf16.msra.mxu1 %v2368_v29 }
 0x165   : > { %2343 = vmatpush3.bf16.msra.mxu0 %v2340_v34 }
 0x167   : > { %1018 = vmax.xlane.f32.xlu0 %v3051_v33 }
 0x168   : > { %1020 = vmax.xlane.f32.xlu1 %v3055_v36 }
 0x16b   : > { %990 = vmax.xlane.f32.xlu0 %v3061_v39 }
 0x16c   : > { %992 = vmax.xlane.f32.xlu1 %v3065_v42 }
 0x16f   : > { %1022 = vmax.xlane.f32.xlu0 %v3071_v44 }
 0x170   : > { %1024 = vmax.xlane.f32.xlu1 %v3075_v48 }
 0x173   : > { %994 = vmax.xlane.f32.xlu0 %v3081_v51 }
 0x174   : > { %996 = vmax.xlane.f32.xlu1 %v3085_v53 }
 0x177   : > { %1026 = vmax.xlane.f32.xlu0 %v3091_v54 }
 0x178   : > { %1028 = vmax.xlane.f32.xlu1 %v3095_v58 }
 0x17b   : > { %998 = vmax.xlane.f32.xlu0 %v3101_v61 }
 0x17c   : > { %1000 = vmax.xlane.f32.xlu1 %v3105_v0 }
 0x17f   : > { %1030 = vmax.xlane.f32.xlu0 %v3111_v1 }
 0x180   : > { %1032 = vmax.xlane.f32.xlu1 %v3115_v3 }
 0x1d0   : > { %v973_v35 = vpop.xlane.xlu0 %972 }
 0x1d1   : > { %v1005_v38 = vpop.xlane.xlu1 %1004  ;;  %v1035_v41 = vsub.f32 %v2961_v31, %v973_v35 }
 0x1d2   : > { %v1051_v45 = vsub.f32 %v2965_v32, %v1005_v38 }
 0x1d3   : > { %v1068_v46 = vmul.f32 1.442695, %v1035_v41 }
 0x1d4   : > { %v1100_v49 = vmul.f32 1.442695, %v1051_v45  ;;  %v971_v52 = vpop.xlane.xlu0 %970 }
 0x1d5   : > { %2450 = vpow2.f32 %v1068_v46  ;;  %v1003_v56 = vpop.xlane.xlu1 %1002  ;;  %v1034_v57 = vsub.f32 %v2975_v40, %v971_v52 }
 0x1d6   : > { %v1050_v60 = vsub.f32 %v2971_v37, %v1003_v56  ;;  %2452 = vpow2.f32 %v1100_v49 }
 0x1d7   : > { %v1066_v62 = vmul.f32 1.442695, %v1034_v57  ;;  %v947_v57 = vld [vmem:[%s3123_s6 + $0x48] sm:$0xff] }
 0x1d8   : > { %v975_v22 = vpop.xlane.xlu0 %974  ;;  %v1098_v26 = vmul.f32 1.442695, %v1050_v60  ;;  %v960_v60 = vld [vmem:[%s3123_s6 + $0xb0] sm:$0xff] }
 0x1d9   : > { %2454 = vpow2.f32 %v1066_v62  ;;  %v977_v4 = vpop.xlane.xlu1 %976  ;;  %v1036_v5 = vsub.f32 %v2981_v43, %v975_v22 }
 0x1da   : > { %v1037_v31 = vsub.f32 %v2985_v47, %v977_v4  ;;  %2456 = vpow2.f32 %v1098_v26  ;;  %v961_v26 = vld [vmem:[%s3123_s6 + $0xb8] sm:$0xff] }
 0x1db   : > { %v1070_v8 = vmul.f32 1.442695, %v1036_v5 }
 0x1dc   : > { %v1072_v32 = vmul.f32 1.442695, %v1037_v31  ;;  %v1007_v6 = vpop.xlane.xlu0 %1006 }
 0x1dd   : > { %v1009_v9 = vpop.xlane.xlu1 %1008  ;;  %v1052_v10 = vsub.f32 %v2991_v50, %v1007_v6 }
 0x1de   : > { %2458 = vpow2.f32 %v1072_v32  ;;  %v1053_v37 = vsub.f32 %v2995_v55, %v1009_v9  ;;  %v948_v9 = vld [vmem:[%s3123_s6 + $0x50] sm:$0xff] }
 0x1df   : > { %v3147_v40 = vpop.eup %2450  ;;  %2460 = vpow2.f32 %v1070_v8  ;;  %v1102_v43 = vmul.f32 1.442695, %v1052_v10  ;;  %v949_v10 = vld [vmem:[%s3123_s6 + $0x58] sm:$0xff] }
 0x1e0   : > { %v1104_v12 = vmul.f32 1.442695, %v1053_v37  ;;  %v979_v13 = vpop.xlane.xlu0 %978  ;;  %1132 = vadd.xlane.f32.xlu1 %v3147_v40  ;;  %v3151_v16 = vpop.eup %2452  ;;  %v962_v37 = vld [vmem:[%s3123_s6 + $0xc0] sm:$0xff] }
 0x1e1   : > { %v981_v14 = vpop.xlane.xlu1 %980  ;;  %v1038_v47 = vsub.f32 %v3001_v59, %v979_v13  ;;  %v2348_v13 = vpack.c.bf16 %v949_v10, %v948_v9 }
 0x1e2   : > { %2462 = vpow2.f32 %v1104_v12  ;;  %v1039_v17 = vsub.f32 %v3005_v63, %v981_v14 }
 0x1e3   : > { %v3154_v50 = vpop.eup %2454  ;;  %2464 = vpow2.f32 %v1102_v43  ;;  %v1074_v20 = vmul.f32 1.442695, %v1038_v47  ;;  %v963_v43 = vld [vmem:[%s3123_s6 + $0xc8] sm:$0xff] }
 0x1e4   : > { %v1076_v19 = vmul.f32 1.442695, %v1039_v17  ;;  %v1011_v55 = vpop.xlane.xlu0 %1010  ;;  %1164 = vadd.xlane.f32.xlu1 %v3151_v16  ;;  %1130 = vadd.xlane.f32.xlu0 %v3154_v50  ;;  %v3160_v25 = vpop.eup %2456 }
 0x1e5   : > { %v1013_v21 = vpop.xlane.xlu1 %1012  ;;  %v1054_v23 = vsub.f32 %v3011_v2, %v1011_v55 }
 0x1e6   : > { %2466 = vpow2.f32 %v1076_v19  ;;  %v1055_v59 = vsub.f32 %v3015_v7, %v1013_v21  ;;  %v950_v21 = vld [vmem:[%s3123_s6 + $0x60] sm:$0xff] }
 0x1e7   : > { %2468 = vpow2.f32 %v1074_v20  ;;  %v1106_v34 = vmul.f32 1.442695, %v1054_v23  ;;  %v951_v23 = vld [vmem:[%s3123_s6 + $0x68] sm:$0xff] }
 0x1e8   : > { %v3162_v27 = vpop.eup %2458  ;;  %v1108_v63 = vmul.f32 1.442695, %v1055_v59  ;;  %v983_v29 = vpop.xlane.xlu0 %982  ;;  %1162 = vadd.xlane.f32.xlu0 %v3160_v25  ;;  %v964_v59 = vld [vmem:[%s3123_s6 + $0xd0] sm:$0xff] }
 0x1e9   : > { %v985_v35 = vpop.xlane.xlu1 %984  ;;  %v1040_v38 = vsub.f32 %v3021_v11, %v983_v29  ;;  %1136 = vadd.xlane.f32.xlu1 %v3162_v27  ;;  %v3168_v7 = vpop.eup %2460  ;;  %v2352_v29 = vpack.c.bf16 %v951_v23, %v950_v21 }
 0x1ea   : > { %2470 = vpow2.f32 %v1108_v63  ;;  %v1041_v2 = vsub.f32 %v3025_v15, %v985_v35  ;;  %v946_v15 = vld [vmem:[%s3123_s6 + $0x40] sm:$0xff] }
 0x1eb   : > { %2472 = vpow2.f32 %v1106_v34  ;;  %v1078_v49 = vmul.f32 1.442695, %v1040_v38  ;;  %v2344_v22 = vpack.c.bf16 %v947_v57, %v946_v15  ;;  %v965_v34 = vld [vmem:[%s3123_s6 + $0xd8] sm:$0xff] }
 0x1ec   : > { %v3170_v41 = vpop.eup %2462  ;;  %v1080_v45 = vmul.f32 1.442695, %v1041_v2  ;;  %v1015_v46 = vpop.xlane.xlu0 %1014  ;;  %1134 = vadd.xlane.f32.xlu0 %v3168_v7 }
 0x1ed   : > { %v1017_v11 = vpop.xlane.xlu1 %1016  ;;  %v1056_v52 = vsub.f32 %v3031_v18, %v1015_v46  ;;  %1168 = vadd.xlane.f32.xlu1 %v3170_v41  ;;  %v3179_v62 = vpop.eup %2464  ;;  %v2372_v18 = vpack.c.bf16 %v961_v26, %v960_v60  ;;  %2345 = vmatprep.subr.bf16.mxu0 %v2344_v22  ;;  %v967_v60 = vld [vmem:[%s3123_s6 + $0xe8] sm:$0xff] }
 0x1ee   : > { %2474 = vpow2.f32 %v1080_v45  ;;  %v1057_v56 = vsub.f32 %v3035_v24, %v1017_v11  ;;  %2347 = vmatpush3.bf16.msra.mxu0 %v2344_v22  ;;  %v952_v11 = vld [vmem:[%s3123_s6 + $0x70] sm:$0xff] }
 0x1ef   : > { %2476 = vpow2.f32 %v1078_v49  ;;  %v1110_v24 = vmul.f32 1.442695, %v1056_v52  ;;  %2373 = vmatprep.subr.bf16.mxu1 %v2372_v18  ;;  %2349 = vmatprep.subr.bf16.mxu0 %v2348_v13  ;;  %v953_v52 = vld [vmem:[%s3123_s6 + $0x78] sm:$0xff] }
 0x1f0   : > { %v3182_v4 = vpop.eup %2466  ;;  %v1112_v5 = vmul.f32 1.442695, %v1057_v56  ;;  %v987_v31 = vpop.xlane.xlu0 %986  ;;  %1166 = vadd.xlane.f32.xlu0 %v3179_v62  ;;  %2375 = vmatpush3.bf16.msra.mxu1 %v2372_v18  ;;  %v966_v56 = vld [vmem:[%s3123_s6 + $0xe0] sm:$0xff]  ;;  %v2356_v57 = vpack.c.bf16 %v953_v52, %v952_v11 }
 0x1f1   : > { %v989_v32 = vpop.xlane.xlu1 %988  ;;  %v1042_v6 = vsub.f32 %v3041_v28, %v987_v31  ;;  %1140 = vadd.xlane.f32.xlu1 %v3182_v4  ;;  %v3191_v12 = vpop.eup %2468 }
 0x1f2   : > { %2478 = vpow2.f32 %v1112_v5  ;;  %v1043_v8 = vsub.f32 %v3045_v30, %v989_v32  ;;  %v2376_v30 = vpack.c.bf16 %v963_v43, %v962_v37  ;;  %2351 = vmatpush3.bf16.msra.mxu0 %v2348_v13  ;;  %v2384_v5 = vpack.c.bf16 %v967_v60, %v966_v56  ;;  %v968_v32 = vld [vmem:[%s3123_s6 + $0xf0] sm:$0xff] }
 0x1f3   : > { %2480 = vpow2.f32 %v1110_v24  ;;  %v1082_v17 = vmul.f32 1.442695, %v1042_v6  ;;  %2353 = vmatprep.subr.bf16.mxu0 %v2352_v29  ;;  %v969_v6 = vld [vmem:[%s3123_s6 + $0xf8] sm:$0xff] }
 0x1f4   : > { %v3194_v14 = vpop.eup %2470  ;;  %v1084_v28 = vmul.f32 1.442695, %v1043_v8  ;;  %v1019_v47 = vpop.xlane.xlu0 %1018  ;;  %1138 = vadd.xlane.f32.xlu0 %v3191_v12  ;;  %2377 = vmatprep.subr.bf16.mxu1 %v2376_v30  ;;  %v2388_v9 = vpack.c.bf16 %v969_v6, %v968_v32 }
 0x1f5   : > { %v1021_v19 = vpop.xlane.xlu1 %1020  ;;  %v1058_v55 = vsub.f32 %v3051_v33, %v1019_v47  ;;  %1172 = vadd.xlane.f32.xlu1 %v3194_v14  ;;  %v3203_v63 = vpop.eup %2472  ;;  %2379 = vmatpush3.bf16.msra.mxu1 %v2376_v30 }
 0x1f6   : > { %2482 = vpow2.f32 %v1084_v28  ;;  %v1059_v20 = vsub.f32 %v3055_v36, %v1021_v19  ;;  %v2380_v36 = vpack.c.bf16 %v965_v34, %v964_v59  ;;  %2355 = vmatpush3.bf16.msra.mxu0 %v2352_v29 }
 0x1f7   : > { %2484 = vpow2.f32 %v1082_v17  ;;  %v1114_v2 = vmul.f32 1.442695, %v1058_v55  ;;  %2357 = vmatprep.subr.bf16.mxu0 %v2356_v57 }
 0x1f8   : > { %v3206_v35 = vpop.eup %2474  ;;  %v1116_v33 = vmul.f32 1.442695, %v1059_v20  ;;  %v991_v38 = vpop.xlane.xlu0 %990  ;;  %1170 = vadd.xlane.f32.xlu0 %v3203_v63  ;;  %2381 = vmatprep.subr.bf16.mxu1 %v2380_v36 }
 0x1f9   : > { %v993_v45 = vpop.xlane.xlu1 %992  ;;  %v1044_v46 = vsub.f32 %v3061_v39, %v991_v38  ;;  %1144 = vadd.xlane.f32.xlu1 %v3206_v35  ;;  %v3215_v15 = vpop.eup %2476  ;;  %2383 = vmatpush3.bf16.msra.mxu1 %v2380_v36 }
 0x1fa   : > { %2486 = vpow2.f32 %v1116_v33  ;;  %v1045_v49 = vsub.f32 %v3065_v42, %v993_v45  ;;  %2385 = vmatprep.subr.bf16.mxu1 %v2384_v5  ;;  %2359 = vmatpush3.bf16.msra.mxu0 %v2356_v57 }
 0x1fb   : > { %2488 = vpow2.f32 %v1114_v2  ;;  %v1086_v42 = vmul.f32 1.442695, %v1044_v46 }
 0x1fc   : > { %v3218_v22 = vpop.eup %2478  ;;  %v1088_v39 = vmul.f32 1.442695, %v1045_v49  ;;  %v1023_v26 = vpop.xlane.xlu0 %1022  ;;  %1142 = vadd.xlane.f32.xlu0 %v3215_v15 }
 0x1fd   : > { %v1025_v31 = vpop.xlane.xlu1 %1024  ;;  %v1060_v18 = vsub.f32 %v3071_v44, %v1023_v26  ;;  %1176 = vadd.xlane.f32.xlu1 %v3218_v22  ;;  %v3226_v8 = vpop.eup %2480  ;;  %2387 = vmatpush3.bf16.msra.mxu1 %v2384_v5 }
 0x1fe   : > { %2490 = vpow2.f32 %v1088_v39  ;;  %v1061_v24 = vsub.f32 %v3075_v48, %v1025_v31  ;;  %2389 = vmatprep.subr.bf16.mxu1 %v2388_v9 }
 0x1ff   : > { %2492 = vpow2.f32 %v1086_v42  ;;  %v1118_v44 = vmul.f32 1.442695, %v1060_v18 }
 0x200   : > { %v3228_v10 = vpop.eup %2482  ;;  %v1120_v37 = vmul.f32 1.442695, %v1061_v24  ;;  %v995_v13 = vpop.xlane.xlu0 %994  ;;  %1174 = vadd.xlane.f32.xlu0 %v3226_v8 }
 0x201   : > { %v997_v43 = vpop.xlane.xlu1 %996  ;;  %v1046_v28 = vsub.f32 %v3081_v51, %v995_v13  ;;  %1148 = vadd.xlane.f32.xlu1 %v3228_v10  ;;  %v3234_v47 = vpop.eup %2484  ;;  %2391 = vmatpush3.bf16.msra.mxu1 %v2388_v9 }
 0x202   : > { %2494 = vpow2.f32 %v1120_v37  ;;  %v1047_v48 = vsub.f32 %v3085_v53, %v997_v43 }
 0x203   : > { %2496 = vpow2.f32 %v1118_v44  ;;  %v1090_v55 = vmul.f32 1.442695, %v1046_v28 }
 0x204   : > { %v3236_v30 = vpop.eup %2486  ;;  %v1092_v17 = vmul.f32 1.442695, %v1047_v48  ;;  %v1027_v19 = vpop.xlane.xlu0 %1026  ;;  %1146 = vadd.xlane.f32.xlu0 %v3234_v47 }
 0x205   : > { %v1029_v20 = vpop.xlane.xlu1 %1028  ;;  %v1062_v51 = vsub.f32 %v3091_v54, %v1027_v19  ;;  %1180 = vadd.xlane.f32.xlu1 %v3236_v30  ;;  %v3242_v53 = vpop.eup %2488 }
 0x206   : > { %2498 = vpow2.f32 %v1092_v17  ;;  %v1063_v21 = vsub.f32 %v3095_v58, %v1029_v20 }
 0x207   : > { %2500 = vpow2.f32 %v1090_v55  ;;  %v1122_v34 = vmul.f32 1.442695, %v1062_v51 }
 0x208   : > { %v3244_v23 = vpop.eup %2490  ;;  %v1124_v59 = vmul.f32 1.442695, %v1063_v21  ;;  %1178 = vadd.xlane.f32.xlu0 %v3242_v53  ;;  %v999_v29 = vpop.xlane.xlu0 %998 }
 0x209   : > { %1152 = vadd.xlane.f32.xlu1 %v3244_v23  ;;  %v1001_v33 = vpop.xlane.xlu1 %1000  ;;  %v1048_v54 = vsub.f32 %v3101_v61, %v999_v29  ;;  %v3250_v36 = vpop.eup %2492 }
 0x20a   : > { %2502 = vpow2.f32 %v1124_v59  ;;  %v1049_v38 = vsub.f32 %v3105_v0, %v1001_v33 }
 0x20b   : > { %2504 = vpow2.f32 %v1122_v34  ;;  %v1094_v46 = vmul.f32 1.442695, %v1048_v54 }
 0x20c   : > { %v3252_v58 = vpop.eup %2494  ;;  %v1096_v2 = vmul.f32 1.442695, %v1049_v38  ;;  %1150 = vadd.xlane.f32.xlu0 %v3250_v36  ;;  %v1031_v45 = vpop.xlane.xlu0 %1030 }
 0x20d   : > { %1184 = vadd.xlane.f32.xlu1 %v3252_v58  ;;  %v1033_v49 = vpop.xlane.xlu1 %1032  ;;  %v1064_v11 = vsub.f32 %v3111_v1, %v1031_v45  ;;  %v3258_v52 = vpop.eup %2496 }
 0x20e   : > { %2506 = vpow2.f32 %v1096_v2  ;;  %v1065_v61 = vsub.f32 %v3115_v3, %v1033_v49 }
 0x20f   : > { %2508 = vpow2.f32 %v1094_v46  ;;  %v1126_v57 = vmul.f32 1.442695, %v1064_v11 }
 0x210   : > { %v3260_v0 = vpop.eup %2498  ;;  %v1128_v56 = vmul.f32 1.442695, %v1065_v61  ;;  %1182 = vadd.xlane.f32.xlu0 %v3258_v52 }
 0x211   : > { %1156 = vadd.xlane.f32.xlu1 %v3260_v0  ;;  %v3264_v60 = vpop.eup %2500 }
 0x212   : > { %2510 = vpow2.f32 %v1128_v56 }
 0x213   : > { %2512 = vpow2.f32 %v1126_v57 }
 0x214   : > { %v3266_v39 = vpop.eup %2502  ;;  %1154 = vadd.xlane.f32.xlu0 %v3264_v60 }
 0x215   : > { %1188 = vadd.xlane.f32.xlu1 %v3266_v39  ;;  %v3270_v1 = vpop.eup %2504 }
 0x218   : > { %v3272_v3 = vpop.eup %2506  ;;  %1186 = vadd.xlane.f32.xlu0 %v3270_v1 }
 0x219   : > { %1160 = vadd.xlane.f32.xlu1 %v3272_v3  ;;  %v3276_v26 = vpop.eup %2508 }
 0x21c   : > { %v3278_v5 = vpop.eup %2510  ;;  %1158 = vadd.xlane.f32.xlu0 %v3276_v26 }
 0x21d   : > { %1192 = vadd.xlane.f32.xlu1 %v3278_v5  ;;  %v3282_v42 = vpop.eup %2512 }
 0x220   : > { %1190 = vadd.xlane.f32.xlu0 %v3282_v42 }
 0x26d   : > { %v1133_v31 = vpop.xlane.xlu1 %1132 }
 0x26e   : > { %2514 = vrcp.f32 %v1133_v31 }
 0x271   : > { %v1165_v18 = vpop.xlane.xlu1 %1164  ;;  %v1131_v24 = vpop.xlane.xlu0 %1130 }
 0x272   : > { %2516 = vrcp.f32 %v1165_v18 }
 0x273   : > { %2518 = vrcp.f32 %v1131_v24 }
 0x275   : > { %v1163_v32 = vpop.xlane.xlu0 %1162 }
 0x276   : > { %v1137_v6 = vpop.xlane.xlu1 %1136  ;;  %2520 = vrcp.f32 %v1163_v32 }
 0x277   : > { %2522 = vrcp.f32 %v1137_v6 }
 0x278   : > { %v2515_v9 = vpop.eup %2514 }
 0x279   : > { %v1227_v37 = vmul.f32 %v2515_v9, %v3147_v40  ;;  %v1135_v13 = vpop.xlane.xlu0 %1134 }
 0x27a   : > { %v1169_v44 = vpop.xlane.xlu1 %1168  ;;  %2524 = vrcp.f32 %v1135_v13 }
 0x27b   : > { %1259 = vst [vmem:[%s3289_s12 + $0x8] sm:$0xff] %v1227_v37  ;;  %2526 = vrcp.f32 %v1169_v44 }
 0x27c   : > { %v2517_v43 = vpop.eup %2516 }
 0x27d   : > { %v2519_v28 = vpop.eup %2518  ;;  %v1243_v48 = vmul.f32 %v2517_v43, %v3151_v16  ;;  %v1167_v17 = vpop.xlane.xlu0 %1166 }
 0x27e   : > { %v1141_v19 = vpop.xlane.xlu1 %1140  ;;  %2528 = vrcp.f32 %v1167_v17  ;;  %v1226_v40 = vmul.f32 %v2519_v28, %v3154_v50 }
 0x27f   : > { %1275 = vst [vmem:[%s3289_s12 + $0x88] sm:$0xff] %v1243_v48  ;;  %2530 = vrcp.f32 %v1141_v19 }
 0x280   : > { %v2521_v55 = vpop.eup %2520  ;;  %1258 = vst [vmem:[%s3289_s12] sm:$0xff] %v1226_v40  ;;  %2152 = vmatprep.mubr.f32.mxu0 %v1226_v40 }
 0x281   : > { %v2523_v20 = vpop.eup %2522  ;;  %2153 = vmatmul.mubr.f32.vlgmr.msra.gmra.mrb[16].mxu0 %v1227_v37  ;;  %v1139_v51 = vpop.xlane.xlu0 %1138  ;;  %v1242_v21 = vmul.f32 %v2521_v55, %v3160_v25 }
 0x282   : > { %v1173_v59 = vpop.xlane.xlu1 %1172  ;;  %2532 = vrcp.f32 %v1139_v51  ;;  %v1229_v16 = vmul.f32 %v2523_v20, %v3162_v27 }
 0x283   : > { %2534 = vrcp.f32 %v1173_v59  ;;  %1274 = vst [vmem:[%s3289_s12 + $0x80] sm:$0xff] %v1242_v21  ;;  %2208 = vmatprep.mubr.f32.mxu1 %v1242_v21 }
 0x284   : > { %v2525_v50 = vpop.eup %2524  ;;  %2209 = vmatmul.mubr.f32.vlgmr.msra.gmra.mrb[16].mxu1 %v1243_v48  ;;  %1261 = vst [vmem:[%s3289_s12 + $0x18] sm:$0xff] %v1229_v16 }
 0x285   : > { %v2527_v29 = vpop.eup %2526  ;;  %v1171_v34 = vpop.xlane.xlu0 %1170  ;;  %v1228_v33 = vmul.f32 %v2525_v50, %v3168_v7 }
 0x286   : > { %v1145_v54 = vpop.xlane.xlu1 %1144  ;;  %2536 = vrcp.f32 %v1171_v34  ;;  %v1245_v25 = vmul.f32 %v2527_v29, %v3170_v41 }
 0x287   : > { %2538 = vrcp.f32 %v1145_v54  ;;  %1260 = vst [vmem:[%s3289_s12 + $0x10] sm:$0xff] %v1228_v33  ;;  %2155 = vmatprep.mubr.f32.mxu0 %v1228_v33 }
 0x288   : > { %v2529_v27 = vpop.eup %2528  ;;  %2156 = vmatmul.mubr.f32.gmra.mrb[18].mxu0 %v1229_v16  ;;  %1277 = vst [vmem:[%s3289_s12 + $0x98] sm:$0xff] %v1245_v25 }
 0x289   : > { %v2531_v38 = vpop.eup %2530  ;;  %v1143_v2 = vpop.xlane.xlu0 %1142  ;;  %v1244_v45 = vmul.f32 %v2529_v27, %v3179_v62 }
 0x28a   : > { %v1177_v46 = vpop.xlane.xlu1 %1176  ;;  %2540 = vrcp.f32 %v1143_v2  ;;  %v1231_v7 = vmul.f32 %v2531_v38, %v3182_v4 }
 0x28b   : > { %2542 = vrcp.f32 %v1177_v46  ;;  %1276 = vst [vmem:[%s3289_s12 + $0x90] sm:$0xff] %v1244_v45  ;;  %2211 = vmatprep.mubr.f32.mxu1 %v1244_v45 }
 0x28c   : > { %v2533_v41 = vpop.eup %2532  ;;  %2212 = vmatmul.mubr.f32.gmra.mrb[18].mxu1 %v1245_v25  ;;  %1263 = vst [vmem:[%s3289_s12 + $0x28] sm:$0xff] %v1231_v7 }
 0x28d   : > { %v2535_v49 = vpop.eup %2534  ;;  %v1175_v11 = vpop.xlane.xlu0 %1174  ;;  %v1230_v61 = vmul.f32 %v2533_v41, %v3191_v12 }
 0x28e   : > { %v1149_v56 = vpop.xlane.xlu1 %1148  ;;  %2544 = vrcp.f32 %v1175_v11  ;;  %v1247_v62 = vmul.f32 %v2535_v49, %v3194_v14 }
 0x28f   : > { %2546 = vrcp.f32 %v1149_v56  ;;  %1262 = vst [vmem:[%s3289_s12 + $0x20] sm:$0xff] %v1230_v61  ;;  %2158 = vmatprep.mubr.f32.mxu0 %v1230_v61 }
 0x290   : > { %v2537_v4 = vpop.eup %2536  ;;  %2159 = vmatmul.mubr.f32.gmra.mrb[20].mxu0 %v1231_v7  ;;  %1279 = vst [vmem:[%s3289_s12 + $0xa8] sm:$0xff] %v1247_v62 }
 0x291   : > { %v2539_v57 = vpop.eup %2538  ;;  %v1147_v31 = vpop.xlane.xlu0 %1146  ;;  %v1246_v18 = vmul.f32 %v2537_v4, %v3203_v63 }
 0x292   : > { %v1181_v24 = vpop.xlane.xlu1 %1180  ;;  %2548 = vrcp.f32 %v1147_v31  ;;  %v1233_v12 = vmul.f32 %v2539_v57, %v3206_v35 }
 0x293   : > { %2550 = vrcp.f32 %v1181_v24  ;;  %1278 = vst [vmem:[%s3289_s12 + $0xa0] sm:$0xff] %v1246_v18  ;;  %2214 = vmatprep.mubr.f32.mxu1 %v1246_v18 }
 0x294   : > { %v2541_v14 = vpop.eup %2540  ;;  %2215 = vmatmul.mubr.f32.gmra.mrb[20].mxu1 %v1247_v62  ;;  %1265 = vst [vmem:[%s3289_s12 + $0x38] sm:$0xff] %v1233_v12 }
 0x295   : > { %v2543_v32 = vpop.eup %2542  ;;  %v1179_v6 = vpop.xlane.xlu0 %1178  ;;  %v1232_v9 = vmul.f32 %v2541_v14, %v3215_v15 }
 0x296   : > { %v1153_v37 = vpop.xlane.xlu1 %1152  ;;  %2552 = vrcp.f32 %v1179_v6  ;;  %v1249_v63 = vmul.f32 %v2543_v32, %v3218_v22 }
 0x297   : > { %2554 = vrcp.f32 %v1153_v37  ;;  %1264 = vst [vmem:[%s3289_s12 + $0x30] sm:$0xff] %v1232_v9  ;;  %2161 = vmatprep.mubr.f32.mxu0 %v1232_v9 }
 0x298   : > { %v2545_v35 = vpop.eup %2544  ;;  %2162 = vmatmul.mubr.f32.gmra.mrb[22].mxu0 %v1233_v12  ;;  %1281 = vst [vmem:[%s3289_s12 + $0xb8] sm:$0xff] %v1249_v63 }
 0x299   : > { %v2547_v13 = vpop.eup %2546  ;;  %v1151_v44 = vpop.xlane.xlu0 %1150  ;;  %v1248_v43 = vmul.f32 %v2545_v35, %v3226_v8 }
 0x29a   : > { %v1185_v28 = vpop.xlane.xlu1 %1184  ;;  %2556 = vrcp.f32 %v1151_v44  ;;  %v1235_v15 = vmul.f32 %v2547_v13, %v3228_v10 }
 0x29b   : > { %2558 = vrcp.f32 %v1185_v28  ;;  %1280 = vst [vmem:[%s3289_s12 + $0xb0] sm:$0xff] %v1248_v43  ;;  %2217 = vmatprep.mubr.f32.mxu1 %v1248_v43 }
 0x29c   : > { %v2549_v22 = vpop.eup %2548  ;;  %2218 = vmatmul.mubr.f32.gmra.mrb[22].mxu1 %v1249_v63  ;;  %1267 = vst [vmem:[%s3289_s12 + $0x48] sm:$0xff] %v1235_v15 }
 0x29d   : > { %v2551_v48 = vpop.eup %2550  ;;  %v1183_v17 = vpop.xlane.xlu0 %1182  ;;  %v1234_v19 = vmul.f32 %v2549_v22, %v3234_v47 }
 0x29e   : > { %v1157_v40 = vpop.xlane.xlu1 %1156  ;;  %2560 = vrcp.f32 %v1183_v17  ;;  %v1251_v8 = vmul.f32 %v2551_v48, %v3236_v30 }
 0x29f   : > { %2562 = vrcp.f32 %v1157_v40  ;;  %1266 = vst [vmem:[%s3289_s12 + $0x40] sm:$0xff] %v1234_v19  ;;  %2164 = vmatprep.mubr.f32.mxu0 %v1234_v19 }
 0x2a0   : > { %v2553_v10 = vpop.eup %2552  ;;  %2165 = vmatmul.mubr.f32.gmra.mrb[24].mxu0 %v1235_v15  ;;  %1283 = vst [vmem:[%s3289_s12 + $0xc8] sm:$0xff] %v1251_v8 }
 0x2a1   : > { %v2555_v55 = vpop.eup %2554  ;;  %v1155_v20 = vpop.xlane.xlu0 %1154  ;;  %v1250_v51 = vmul.f32 %v2553_v10, %v3242_v53 }
 0x2a2   : > { %v1189_v21 = vpop.xlane.xlu1 %1188  ;;  %2564 = vrcp.f32 %v1155_v20  ;;  %v1237_v47 = vmul.f32 %v2555_v55, %v3244_v23 }
 0x2a3   : > { %2566 = vrcp.f32 %v1189_v21  ;;  %1282 = vst [vmem:[%s3289_s12 + $0xc0] sm:$0xff] %v1250_v51  ;;  %2220 = vmatprep.mubr.f32.mxu1 %v1250_v51 }
 0x2a4   : > { %v2557_v30 = vpop.eup %2556  ;;  %2221 = vmatmul.mubr.f32.gmra.mrb[24].mxu1 %v1251_v8  ;;  %1269 = vst [vmem:[%s3289_s12 + $0x58] sm:$0xff] %v1237_v47 }
 0x2a5   : > { %v2559_v59 = vpop.eup %2558  ;;  %v1187_v16 = vpop.xlane.xlu0 %1186  ;;  %v1236_v50 = vmul.f32 %v2557_v30, %v3250_v36 }
 0x2a6   : > { %v1161_v29 = vpop.xlane.xlu1 %1160  ;;  %2568 = vrcp.f32 %v1187_v16  ;;  %v1253_v53 = vmul.f32 %v2559_v59, %v3252_v58 }
 0x2a7   : > { %2570 = vrcp.f32 %v1161_v29  ;;  %1268 = vst [vmem:[%s3289_s12 + $0x50] sm:$0xff] %v1236_v50  ;;  %2167 = vmatprep.mubr.f32.mxu0 %v1236_v50 }
 0x2a8   : > { %v2561_v23 = vpop.eup %2560  ;;  %2168 = vmatmul.mubr.f32.gmra.mrb[26].mxu0 %v1237_v47  ;;  %1285 = vst [vmem:[%s3289_s12 + $0xd8] sm:$0xff] %v1253_v53 }
 0x2a9   : > { %v2563_v34 = vpop.eup %2562  ;;  %v1159_v33 = vpop.xlane.xlu0 %1158  ;;  %v1252_v54 = vmul.f32 %v2561_v23, %v3258_v52 }
 0x2aa   : > { %v1193_v25 = vpop.xlane.xlu1 %1192  ;;  %2572 = vrcp.f32 %v1159_v33  ;;  %v1239_v36 = vmul.f32 %v2563_v34, %v3260_v0 }
 0x2ab   : > { %2574 = vrcp.f32 %v1193_v25  ;;  %1284 = vst [vmem:[%s3289_s12 + $0xd0] sm:$0xff] %v1252_v54  ;;  %2223 = vmatprep.mubr.f32.mxu1 %v1252_v54 }
 0x2ac   : > { %v2565_v58 = vpop.eup %2564  ;;  %2224 = vmatmul.mubr.f32.gmra.mrb[26].mxu1 %v1253_v53  ;;  %1271 = vst [vmem:[%s3289_s12 + $0x68] sm:$0xff] %v1239_v36 }
 0x2ad   : > { %v2567_v27 = vpop.eup %2566  ;;  %v1191_v38 = vpop.xlane.xlu0 %1190  ;;  %v1238_v2 = vmul.f32 %v2565_v58, %v3264_v60 }
 0x2ae   : > { %2576 = vrcp.f32 %v1191_v38  ;;  %v1255_v52 = vmul.f32 %v2567_v27, %v3266_v39 }
 0x2af   : > { %1270 = vst [vmem:[%s3289_s12 + $0x60] sm:$0xff] %v1238_v2  ;;  %2170 = vmatprep.mubr.f32.mxu0 %v1238_v2 }
 0x2b0   : > { %v2569_v0 = vpop.eup %2568  ;;  %2171 = vmatmul.mubr.f32.gmra.mrb[28].mxu0 %v1239_v36  ;;  %1287 = vst [vmem:[%s3289_s12 + $0xe8] sm:$0xff] %v1255_v52 }
 0x2b1   : > { %v2571_v45 = vpop.eup %2570  ;;  %v1254_v46 = vmul.f32 %v2569_v0, %v3270_v1 }
 0x2b2   : > { %v1241_v7 = vmul.f32 %v2571_v45, %v3272_v3 }
 0x2b3   : > { %1286 = vst [vmem:[%s3289_s12 + $0xe0] sm:$0xff] %v1254_v46  ;;  %2226 = vmatprep.mubr.f32.mxu1 %v1254_v46 }
 0x2b4   : > { %v2573_v60 = vpop.eup %2572  ;;  %2227 = vmatmul.mubr.f32.gmra.mrb[28].mxu1 %v1255_v52  ;;  %1273 = vst [vmem:[%s3289_s12 + $0x78] sm:$0xff] %v1241_v7 }
 0x2b5   : > { %v2575_v39 = vpop.eup %2574  ;;  %v1240_v41 = vmul.f32 %v2573_v60, %v3276_v26 }
 0x2b6   : > { %v1257_v49 = vmul.f32 %v2575_v39, %v3278_v5 }
 0x2b7   : > { %1272 = vst [vmem:[%s3289_s12 + $0x70] sm:$0xff] %v1240_v41  ;;  %2173 = vmatprep.mubr.f32.mxu0 %v1240_v41 }
 0x2b8   : > { %v2577_v1 = vpop.eup %2576  ;;  %2174 = vmatmul.mubr.f32.gmra.mrb[30].mxu0 %v1241_v7  ;;  %1289 = vst [vmem:[%s3289_s12 + $0xf8] sm:$0xff] %v1257_v49 }
 0x2b9   : > { %v1256_v3 = vmul.f32 %v2577_v1, %v3282_v42 }
 0x2bb   : > { %1288 = vst [vmem:[%s3289_s12 + $0xf0] sm:$0xff] %v1256_v3  ;;  %2229 = vmatprep.mubr.f32.mxu1 %v1256_v3 }
 0x2bc   : > { %2230 = vmatmul.mubr.f32.gmra.mrb[30].mxu1 %v1257_v49 }
 0x2bd   : > { %2603 = shalt.err (!%p2600_p10)
}
 0x2be   : > { %s2604_s28 = scalar_lea.hbm %s3359_s18, 4096  ;;  %s2608_s8 = scalar_lea.hbm %s3486_s5, 16384 }
 0x2bf   : > { %p2605_p11 = scmp.ne.s32.totalorder %s3359_s18, %s2604_s28  ;;  %p2609_p1 = scmp.lt.u32.totalorder %s3359_s18, %s3486_s5 }
 0x2c0   : > { %p2610_p2 = scmp.lt.u32.totalorder %s2608_s8, %s2604_s28  ;;  %p2612_p4 = scmp.lt.u32.totalorder %s2604_s28, %s3359_s18 }
 0x2c1   : > { %p2606_p12 = pnand %p2605_p11, %p2749_p9 }
 0x2c2   : > { %p2611_p3 = por %p2610_p2, %p2609_p1 }
 0x2c3   : > { %p2607_p0 = pneg %p2606_p12 }
 0x2c4   : > { %p2613_p5 = por %p2612_p4, %p2611_p3 }
 0x2c6   : > { %p2614_p6 = pnand %p2613_p5, %p2607_p0 }
 0x2c8   : > { %2617 = shalt.err (!%p2614_p6)
}
 0x2c9   : > { %s2674_s14 = smov 128   ;;  %s2675_s16 = smov 8  }
 0x2ca   : > { %2392 = dma.vmem_to_hbm [thread:$0]  (%p2749_p9), %s3361_s15, 4096, %s3359_s18, %s3365_s19, %s2674_s14, %s2674_s14, %s2675_s16  }
 0x2cb   : > { %s3393_s25 = scalar_lea.vmem %s3485_s4, %s2769_s13 }
 0x354   : > { %v2154_v26 = vpop.f32.mrb[16].mxu0 }
 0x355   : > { %1581 = vst.msk [vmem:[%s3393_s25 + $0x8] sm:$0xff] %vm381_vm0, %v2154_v26  ;;  %v1356_v5 = vpop.f32.mrb[17].mxu0 }
 0x356   : > { %1580 = vst.msk [vmem:[%s3393_s25] sm:$0xff] %vm381_vm0, %v1356_v5 }
 0x357   : > { %v2210_v42 = vpop.f32.mrb[16].mxu1 }
 0x358   : > { %1597 = vst.msk [vmem:[%s3393_s25 + $0x88] sm:$0xff] %vm381_vm0, %v2210_v42  ;;  %v1501_v11 = vpop.f32.mrb[17].mxu1 }
 0x359   : > { %1596 = vst.msk [vmem:[%s3393_s25 + $0x80] sm:$0xff] %vm381_vm0, %v1501_v11 }
 0x35b   : > { %v2157_v61 = vpop.f32.mrb[18].mxu0 }
 0x35c   : > { %1583 = vst.msk [vmem:[%s3393_s25 + $0x18] sm:$0xff] %vm381_vm0, %v2157_v61  ;;  %v1366_v56 = vpop.f32.mrb[19].mxu0 }
 0x35d   : > { %1582 = vst.msk [vmem:[%s3393_s25 + $0x10] sm:$0xff] %vm381_vm0, %v1366_v56 }
 0x35f   : > { %v2213_v62 = vpop.f32.mrb[18].mxu1 }
 0x360   : > { %1599 = vst.msk [vmem:[%s3393_s25 + $0x98] sm:$0xff] %vm381_vm0, %v2213_v62  ;;  %v1511_v4 = vpop.f32.mrb[19].mxu1 }
 0x361   : > { %1598 = vst.msk [vmem:[%s3393_s25 + $0x90] sm:$0xff] %vm381_vm0, %v1511_v4 }
 0x363   : > { %v2160_v57 = vpop.f32.mrb[20].mxu0 }
 0x364   : > { %1585 = vst.msk [vmem:[%s3393_s25 + $0x28] sm:$0xff] %vm381_vm0, %v2160_v57  ;;  %v1376_v31 = vpop.f32.mrb[21].mxu0 }
 0x365   : > { %1584 = vst.msk [vmem:[%s3393_s25 + $0x20] sm:$0xff] %vm381_vm0, %v1376_v31 }
 0x367   : > { %v2216_v18 = vpop.f32.mrb[20].mxu1 }
 0x368   : > { %1601 = vst.msk [vmem:[%s3393_s25 + $0xa8] sm:$0xff] %vm381_vm0, %v2216_v18  ;;  %v1521_v24 = vpop.f32.mrb[21].mxu1 }
 0x369   : > { %1600 = vst.msk [vmem:[%s3393_s25 + $0xa0] sm:$0xff] %vm381_vm0, %v1521_v24 }
 0x36b   : > { %v2163_v12 = vpop.f32.mrb[22].mxu0 }
 0x36c   : > { %1587 = vst.msk [vmem:[%s3393_s25 + $0x38] sm:$0xff] %vm381_vm0, %v2163_v12  ;;  %v1386_v14 = vpop.f32.mrb[23].mxu0 }
 0x36d   : > { %1586 = vst.msk [vmem:[%s3393_s25 + $0x30] sm:$0xff] %vm381_vm0, %v1386_v14 }
 0x36f   : > { %v2219_v32 = vpop.f32.mrb[22].mxu1 }
 0x370   : > { %1603 = vst.msk [vmem:[%s3393_s25 + $0xb8] sm:$0xff] %vm381_vm0, %v2219_v32  ;;  %v1531_v6 = vpop.f32.mrb[23].mxu1 }
 0x371   : > { %1602 = vst.msk [vmem:[%s3393_s25 + $0xb0] sm:$0xff] %vm381_vm0, %v1531_v6 }
 0x373   : > { %v2166_v9 = vpop.f32.mrb[24].mxu0 }
 0x374   : > { %1589 = vst.msk [vmem:[%s3393_s25 + $0x48] sm:$0xff] %vm381_vm0, %v2166_v9  ;;  %v1396_v37 = vpop.f32.mrb[25].mxu0 }
 0x375   : > { %1588 = vst.msk [vmem:[%s3393_s25 + $0x40] sm:$0xff] %vm381_vm0, %v1396_v37 }
 0x377   : > { %v2222_v63 = vpop.f32.mrb[24].mxu1 }
 0x378   : > { %1605 = vst.msk [vmem:[%s3393_s25 + $0xc8] sm:$0xff] %vm381_vm0, %v2222_v63  ;;  %v1541_v35 = vpop.f32.mrb[25].mxu1 }
 0x379   : > { %1604 = vst.msk [vmem:[%s3393_s25 + $0xc0] sm:$0xff] %vm381_vm0, %v1541_v35 }
 0x37b   : > { %v2169_v13 = vpop.f32.mrb[26].mxu0 }
 0x37c   : > { %1591 = vst.msk [vmem:[%s3393_s25 + $0x58] sm:$0xff] %vm381_vm0, %v2169_v13  ;;  %v1406_v44 = vpop.f32.mrb[27].mxu0 }
 0x37d   : > { %1590 = vst.msk [vmem:[%s3393_s25 + $0x50] sm:$0xff] %vm381_vm0, %v1406_v44 }
 0x37f   : > { %v2225_v43 = vpop.f32.mrb[26].mxu1 }
 0x380   : > { %1607 = vst.msk [vmem:[%s3393_s25 + $0xd8] sm:$0xff] %vm381_vm0, %v2225_v43  ;;  %v1551_v28 = vpop.f32.mrb[27].mxu1 }
 0x381   : > { %1606 = vst.msk [vmem:[%s3393_s25 + $0xd0] sm:$0xff] %vm381_vm0, %v1551_v28 }
 0x383   : > { %v2172_v15 = vpop.f32.mrb[28].mxu0 }
 0x384   : > { %1593 = vst.msk [vmem:[%s3393_s25 + $0x68] sm:$0xff] %vm381_vm0, %v2172_v15  ;;  %v1416_v22 = vpop.f32.mrb[29].mxu0 }
 0x385   : > { %1592 = vst.msk [vmem:[%s3393_s25 + $0x60] sm:$0xff] %vm381_vm0, %v1416_v22 }
 0x387   : > { %v2228_v48 = vpop.f32.mrb[28].mxu1 }
 0x388   : > { %1609 = vst.msk [vmem:[%s3393_s25 + $0xe8] sm:$0xff] %vm381_vm0, %v2228_v48  ;;  %v1561_v17 = vpop.f32.mrb[29].mxu1 }
 0x389   : > { %1608 = vst.msk [vmem:[%s3393_s25 + $0xe0] sm:$0xff] %vm381_vm0, %v1561_v17 }
 0x38b   : > { %v2175_v19 = vpop.f32.mrb[30].mxu0 }
 0x38c   : > { %1595 = vst.msk [vmem:[%s3393_s25 + $0x78] sm:$0xff] %vm381_vm0, %v2175_v19  ;;  %v1426_v40 = vpop.f32.mrb[31].mxu0 }
 0x38d   : > { %1594 = vst.msk [vmem:[%s3393_s25 + $0x70] sm:$0xff] %vm381_vm0, %v1426_v40 }
 0x38f   : > { %v2231_v8 = vpop.f32.mrb[30].mxu1 }
 0x390   : > { %1611 = vst.msk [vmem:[%s3393_s25 + $0xf8] sm:$0xff] %vm381_vm0, %v2231_v8  ;;  %v1571_v10 = vpop.f32.mrb[31].mxu1 }
 0x391   : > { %1610 = vst.msk [vmem:[%s3393_s25 + $0xf0] sm:$0xff] %vm381_vm0, %v1571_v10 }
 0x392 PF: > { %p2398_p9 = scmp.ge.s32.totalorder %s2670_s27, 2  ;;  %s1672_s7 = sand.u32 1, %s2650_s23  }
 0x393   : > { %s1673_s13 = scalar_lea.sflag [#allocation5], %s1672_s7 }
 0x394   : > { %p2395_p7 = pnand %p2398_p9, %p2756_p13 }
 0x396   : > { %2645 = dma.done.wait (!%p2395_p7), %s1673_s13, 4096  }
 0x397   : > { %2647 = vsyncadd (!%p2395_p7), %s1673_s13, 4294963200  ;;  %s25_s27 = sadd.s32 1, %s2670_s27   ;;  %s3495_s23 = smov %s2654_s24 }
 0x398   : > { %p22_p8 = scmp.ge.s32.totalorder %s25_s27, 6   ;;  %s3496_s24 = smov %s2658_s0 }
 0x399   : > { %s3497_s0 = smov %s2762_s10  ;;  %s3498_s25 = smov %s2666_s26 }
 0x39a   : > { %s3499_s26 = smov %s3501_s30  ;;  %24 = sbr.rel (!%p22_p8) target bundleno = 19 (0x13), region = 85 }
 0x3a1   :  { %1678 = vsyncpa [#allocation5], 1 }
 0x3a2   :  { %1680 = vsyncpa [#allocation5 + $0x1], 1 }

</bundles_post_ra>
